<compile_context>
chip_gen: v7x
topology: tpu7x:2x2x1
jax: 0.10.0
libtpu: 0.0.40
codegen_flags: <defaults>
</compile_context>

<pallas_src>
import functools
import math

import jax
import jax.numpy as jnp
from jax import lax
from jax.experimental import pallas as pl
from jax.experimental.pallas import tpu as pltpu

_BN_EPS = 1e-5
# Explicit scoped-VMEM limit: above v5e's 16 MiB default, below v7x's 64 MiB physical.
_VMEM_LIMIT_BYTES = 48 * 1024 * 1024


def _round_up(n, m):
    return ((n + m - 1) // m) * m


def _pick_hw_tile(hw_pad, c, itemsize):
    """Largest multiple-of-128 divisor of hw_pad whose (C, T) block is <= ~2 MiB.

    Keeps the double-buffered in/out blocks (x, sab, out) well under the scoped
    VMEM limit on every generation (v7x only has 64 MiB physical VMEM).
    """
    budget = 2 * 1024 * 1024
    max_t = max(128, (budget // max(1, c * itemsize)) // 128 * 128)
    t = min(hw_pad, max_t)
    while hw_pad % t:
        t -= 128
    return t


# ---------------------------------------------------------------------------
# XLA helpers for the tiny q/k projection convs (shared by wrapper & reference)
# ---------------------------------------------------------------------------
def _conv2d_bias(x, w, b, padding):
    y = lax.conv_general_dilated(
        x, w, window_strides=(1, 1), padding=padding,
        dimension_numbers=("NCHW", "OIHW", "NCHW"),
        precision=lax.Precision.HIGHEST)
    return y + b[None, :, None, None]


def _bn_eval(y):
    # BatchNorm2d at PyTorch default init (weight=1, bias=0, running_mean=0,
    # running_var=1), evaluated in inference mode.
    return y * (1.0 / math.sqrt(1.0 + _BN_EPS))


# ---------------------------------------------------------------------------
# Pallas kernels
# ---------------------------------------------------------------------------
def _sab_attn_kernel(gamma_ref, qT_ref, k_ref, x_ref, wv_ref, bv_ref, o_ref,
                     *, hw, hw_pad, c8):
    """Spatial attention core for one batch element.

    qT: (HWp, C8), k: (C8, HWp), x: (C, HWp), wv: (C, C), bv: (C, 1).
    Writes gamma_s * (v @ softmax(q^T k)^T)  -> (C, HWp).
    """
    gamma_s = gamma_ref[0]                       # read the SMEM scalar once, up front
    qT = qT_ref[0]
    kk = k_ref[0]
    if c8 == 1:
        # Outer product via VPU broadcast-multiply: avoids a K=1 MXU matmul.
        aff = qT.astype(jnp.float32) * kk.astype(jnp.float32)       # (HWp, HWp)
    else:
        aff = jnp.dot(qT, kk, preferred_element_type=jnp.float32)
    if hw < hw_pad:
        # Mask padded key columns out of the softmax.
        col = lax.broadcasted_iota(jnp.int32, aff.shape, 1)
        aff = jnp.where(col < hw, aff, jnp.float32(-1e30))
    aff = aff - jnp.max(aff, axis=-1, keepdims=True)
    e = jnp.exp(aff)
    p = e * pl.reciprocal(jnp.sum(e, axis=-1, keepdims=True), approx=False)

    xt = x_ref[0]
    # The 1x1 value conv is just a matmul over channels.
    v = jnp.dot(wv_ref[...], xt, preferred_element_type=jnp.float32) + bv_ref[...]
    # weights[c, n] = sum_m v[c, m] * p[n, m]
    w = lax.dot_general(v, p, (((1,), (1,)), ((), ())),
                        preferred_element_type=jnp.float32)          # (C, HWp)
    o_ref[0] = (gamma_s * w).astype(o_ref.dtype)


def _cab_affinity_kernel(x_ref, p_ref, acc_ref):
    """Pass 1: accumulate affinity = X @ X^T over HW tiles, then row-softmax."""
    kk = pl.program_id(1)

    @pl.when(kk == 0)
    def _init():
        acc_ref[...] = jnp.zeros_like(acc_ref)

    xt = x_ref[0]                                                    # (C, T) native dtype
    acc_ref[...] += lax.dot_general(xt, xt, (((1,), (1,)), ((), ())),
                                    preferred_element_type=jnp.float32)

    @pl.when(kk == pl.num_programs(1) - 1)
    def _finalize():
        aff = acc_ref[...]
        # softmax(rowmax(aff) - aff) is shift-invariant per row, so the stable
        # form collapses to a single min-reduce: exp(rowmin(aff) - aff) / sum.
        e = jnp.exp(jnp.min(aff, axis=-1, keepdims=True) - aff)
        p_ref[0] = e * pl.reciprocal(jnp.sum(e, axis=-1, keepdims=True),
                                     approx=False)


def _cab_apply_kernel(gamma_ref, p_ref, x_ref, sabw_ref, o_ref):
    """Pass 2: out_tile = gamma_c*(P @ x_tile) + 2*x_tile + sabw_tile."""
    gamma_c = gamma_ref[0]                       # read the SMEM scalar once, up front
    xt = x_ref[0]                                                    # (C, T) native dtype
    p = p_ref[0].astype(xt.dtype)                                    # (C, C)
    w = jnp.dot(p, xt, preferred_element_type=jnp.float32)           # (C, T) f32 accum
    xf = xt.astype(jnp.float32)
    # AffinityAttention = (gamma_c*Wc + x) + (gamma_s*Ws + x); sabw = gamma_s*Ws.
    out = gamma_c * w + 2.0 * xf + sabw_ref[0].astype(jnp.float32)
    o_ref[0] = out.astype(o_ref.dtype)


# ---------------------------------------------------------------------------
# Forward wrapper
# ---------------------------------------------------------------------------
def affinity_attention(x, params, gamma_sab, gamma_cab):
    """AffinityAttention forward: SpatialAttentionBlock(x) + ChannelAttentionBlock(x)."""
    B, C, H, W = x.shape
    assert C >= 8, "SpatialAttentionBlock needs in_channels >= 8 (C // 8 projection)"
    C8 = C // 8
    HW = H * W
    HWp = _round_up(HW, 128)          # lane-dense last dim -> unmasked vector stores
    dtype = x.dtype
    T = _pick_hw_tile(HWp, C, dtype.itemsize)
    NK = HWp // T

    gamma_sab = jnp.asarray(gamma_sab, jnp.float32).reshape((1,))
    gamma_cab = jnp.asarray(gamma_cab, jnp.float32).reshape((1,))

    # ---- q/k projections: (1,3)/(3,1) conv + BatchNorm(eval) + ReLU --------
    # TODO(synk): these tiny convolution projections (and inference-mode
    # BatchNorm with default running stats) are evaluated with XLA ops; only
    # the attention / matmul / softmax math below runs inside Pallas kernels.
    q = jax.nn.relu(_bn_eval(_conv2d_bias(x, params["wq"], params["bq"],
                                          ((0, 0), (1, 1)))))
    k = jax.nn.relu(_bn_eval(_conv2d_bias(x, params["wk"], params["bk"],
                                          ((1, 1), (0, 0)))))

    pad3 = ((0, 0), (0, 0), (0, HWp - HW))
    x_flat = jnp.pad(x.reshape(B, C, HW), pad3)                     # native dtype DMA
    q_flat = jnp.pad(q.reshape(B, C8, HW).astype(dtype), pad3)
    k_flat = jnp.pad(k.reshape(B, C8, HW).astype(dtype), pad3)
    qT = q_flat.transpose(0, 2, 1)                                  # (B, HWp, C8)
    wv = params["wv"].reshape(C, C).astype(dtype)
    bv = params["bv"].reshape(C, 1).astype(jnp.float32)

    # ---- Spatial attention core (per-batch kernel; B axis feeds both TCs) --
    # TODO(synk): this kernel materializes the full (HW, HW) spatial affinity
    # per batch element; very large H*W would need a flash-style tiled variant.
    sabw = pl.pallas_call(
        functools.partial(_sab_attn_kernel, hw=HW, hw_pad=HWp, c8=C8),
        out_shape=jax.ShapeDtypeStruct((B, C, HWp), dtype),
        grid_spec=pltpu.PrefetchScalarGridSpec(
            num_scalar_prefetch=0,
            grid=(B,),
            in_specs=[
                pl.BlockSpec(memory_space=pltpu.MemorySpace.SMEM),   # gamma_s
                pl.BlockSpec((1, HWp, C8), lambda b: (b, 0, 0)),     # q^T
                pl.BlockSpec((1, C8, HWp), lambda b: (b, 0, 0)),     # k
                pl.BlockSpec((1, C, HWp), lambda b: (b, 0, 0)),      # x
                pl.BlockSpec((C, C), lambda b: (0, 0)),              # Wv (1x1 conv)
                pl.BlockSpec((C, 1), lambda b: (0, 0)),              # bv
            ],
            out_specs=pl.BlockSpec((1, C, HWp), lambda b: (b, 0, 0)),
        ),
        compiler_params=pltpu.CompilerParams(
            dimension_semantics=("parallel",),
            vmem_limit_bytes=_VMEM_LIMIT_BYTES,
        ),
    )(gamma_sab, qT, k_flat, x_flat, wv, bv)

    # ---- Channel attention pass 1: tiled affinity accumulation + softmax ---
    p_mat = pl.pallas_call(
        _cab_affinity_kernel,
        out_shape=jax.ShapeDtypeStruct((B, C, C), jnp.float32),
        grid_spec=pltpu.PrefetchScalarGridSpec(
            num_scalar_prefetch=0,
            grid=(B, NK),
            in_specs=[pl.BlockSpec((1, C, T), lambda b, kk: (b, 0, kk))],
            out_specs=pl.BlockSpec((1, C, C), lambda b, kk: (b, 0, 0)),
            scratch_shapes=[pltpu.VMEM((C, C), jnp.float32)],
        ),
        compiler_params=pltpu.CompilerParams(
            dimension_semantics=("parallel", "arbitrary"),
            vmem_limit_bytes=_VMEM_LIMIT_BYTES,
        ),
    )(x_flat)

    # ---- Channel attention pass 2 + fused SAB+CAB sum (fully parallel) -----
    out_flat = pl.pallas_call(
        _cab_apply_kernel,
        out_shape=jax.ShapeDtypeStruct((B, C, HWp), dtype),
        grid_spec=pltpu.PrefetchScalarGridSpec(
            num_scalar_prefetch=0,
            grid=(B, NK),
            in_specs=[
                pl.BlockSpec(memory_space=pltpu.MemorySpace.SMEM),    # gamma_c
                pl.BlockSpec((1, C, C), lambda b, kk: (b, 0, 0)),     # P (softmaxed affinity)
                pl.BlockSpec((1, C, T), lambda b, kk: (b, 0, kk)),    # x tile
                pl.BlockSpec((1, C, T), lambda b, kk: (b, 0, kk)),    # gamma_s*Ws tile
            ],
            out_specs=pl.BlockSpec((1, C, T), lambda b, kk: (b, 0, kk)),
        ),
        compiler_params=pltpu.CompilerParams(
            dimension_semantics=("parallel", "parallel"),
            vmem_limit_bytes=_VMEM_LIMIT_BYTES,
        ),
    )(gamma_cab, p_mat, x_flat, sabw)

    return out_flat[:, :, :HW].reshape(B, C, H, W)


# ---------------------------------------------------------------------------
# Pure-JAX reference (mirrors the PyTorch forward)
# ---------------------------------------------------------------------------
def _reference(x, params, gamma_s, gamma_c):
    B, C, H, W = x.shape
    C8 = C // 8
    hp = lax.Precision.HIGHEST

    q = jax.nn.relu(_bn_eval(_conv2d_bias(x, params["wq"], params["bq"],
                                          ((0, 0), (1, 1)))))
    k = jax.nn.relu(_bn_eval(_conv2d_bias(x, params["wk"], params["bk"],
                                          ((1, 1), (0, 0)))))
    v = _conv2d_bias(x, params["wv"], params["bv"], ((0, 0), (0, 0)))
    qf = q.reshape(B, C8, H * W)
    kf = k.reshape(B, C8, H * W)
    vf = v.reshape(B, C, H * W)
    aff = jnp.einsum("bcn,bcm->bnm", qf, kf, precision=hp)
    aff = jax.nn.softmax(aff, axis=-1)
    w_s = jnp.einsum("bcm,bnm->bcn", vf, aff, precision=hp)
    sab = gamma_s * w_s.reshape(B, C, H, W) + x

    xf = x.reshape(B, C, H * W)
    affc = jnp.einsum("bcn,bdn->bcd", xf, xf, precision=hp)
    affc = jnp.max(affc, axis=-1, keepdims=True) - affc
    affc = jax.nn.softmax(affc, axis=-1)
    w_c = jnp.einsum("bcd,bdn->bcn", affc, xf, precision=hp).reshape(B, C, H, W)
    cab = gamma_c * w_c + x
    return sab + cab


if __name__ == "__main__":
    key = jax.random.PRNGKey(0)
    B, C, H, W = 2, 8, 16, 16        # C >= 8 so the C // 8 q/k projection exists
    C8 = C // 8
    ks = jax.random.split(key, 7)
    x = jax.random.normal(ks[0], (B, C, H, W), dtype=jnp.float32)
    params = dict(
        wq=0.2 * jax.random.normal(ks[1], (C8, C, 1, 3), jnp.float32),
        bq=0.1 * jax.random.normal(ks[2], (C8,), jnp.float32),
        wk=0.2 * jax.random.normal(ks[3], (C8, C, 3, 1), jnp.float32),
        bk=0.1 * jax.random.normal(ks[4], (C8,), jnp.float32),
        wv=0.2 * jax.random.normal(ks[5], (C, C, 1, 1), jnp.float32),
        bv=0.1 * jax.random.normal(ks[6], (C,), jnp.float32),
    )

    fwd = jax.jit(affinity_attention)
    # Module __init__ sets both gammas to zeros(1); also run a nonzero gamma to
    # exercise the attention paths.
    for g in (0.0, 0.5):
        gamma = jnp.full((1,), g, dtype=jnp.float32)
        out = fwd(x, params, gamma, gamma)
        jax.block_until_ready(out)
        ref = _reference(x, params, g, g)
        assert out.shape == (B, C, H, W)
        err = float(jnp.max(jnp.abs(out - ref)))
        assert jnp.allclose(out, ref, atol=1e-3, rtol=1e-3), (
            f"mismatch at gamma={g}: max abs err {err}")
    print("KERNEL_OK")
</pallas_src>

<mosaic_0001>
module attributes {stable_mosaic.version = 11 : i64} {
  func.func @_cab_affinity_kernel(%arg0: i32, %arg1: i32, %arg2: memref<1x8x256xf32, #tpu.memory_space<vmem>>, %arg3: memref<1x8x8xf32, #tpu.memory_space<vmem>>, %arg4: memref<8x8xf32, #tpu.memory_space<vmem>>) attributes {dimension_semantics = [#tpu.dimension_semantics<parallel>, #tpu.dimension_semantics<arbitrary>], iteration_bounds = array<i64: 2, 1>, scalar_prefetch = 0 : i64, scratch_operands = 1 : i64, tpu.core_type = #tpu.core_type<tc>, window_params = [{transform_indices = @transform_0, window_bounds = array<i64: 1, 8, 256>}, {transform_indices = @transform_1, window_bounds = array<i64: 1, 8, 8>}]} {
    %c0_i32 = arith.constant 0 : i32
    %0 = arith.cmpi eq, %arg1, %c0_i32 : i32
    %1 = arith.extui %0 : i1 to i32
    %c0_i32_0 = arith.constant 0 : i32
    %2 = arith.cmpi ne, %1, %c0_i32_0 : i32
    scf.if %2 {
      %cst_9 = arith.constant 0.000000e+00 : f32
      %12 = vector.broadcast %cst_9 : f32 to vector<8x8xf32>
      %c0_10 = arith.constant 0 : index
      %c0_11 = arith.constant 0 : index
      %13 = vector.load %arg4[%c0_10, %c0_11] : memref<8x8xf32, #tpu.memory_space<vmem>>, vector<8x8xf32>
      tpu.vector_store %arg4[%c0_10, %c0_11], %12 {strides = array<i32>} : memref<8x8xf32, #tpu.memory_space<vmem>>, vector<8x8xf32>,
    } else {
    }
    %c0 = arith.constant 0 : index
    %c0_1 = arith.constant 0 : index
    %c0_2 = arith.constant 0 : index
    %3 = vector.load %arg2[%c0, %c0_1, %c0_2] : memref<1x8x256xf32, #tpu.memory_space<vmem>>, vector<1x8x256xf32>
    %4 = vector.shape_cast %3 : vector<1x8x256xf32> to vector<8x256xf32>
    %c0_3 = arith.constant 0 : index
    %c0_4 = arith.constant 0 : index
    %5 = vector.load %arg4[%c0_3, %c0_4] : memref<8x8xf32, #tpu.memory_space<vmem>>, vector<8x8xf32>
    %cst = arith.constant dense<0.000000e+00> : vector<8x8xf32>
    %6 = tpu.matmul %4, %4, %cst {dimension_numbers = #tpu.dot_dimension_numbers<[1], [1], [0], [0], [0, 0, 1, 0], [], []>} : vector<8x256xf32>, vector<8x256xf32>, vector<8x8xf32> -> vector<8x8xf32>
    %7 = arith.addf %5, %6 : vector<8x8xf32>
    %c0_5 = arith.constant 0 : index
    %c0_6 = arith.constant 0 : index
    %8 = vector.load %arg4[%c0_5, %c0_6] : memref<8x8xf32, #tpu.memory_space<vmem>>, vector<8x8xf32>
    tpu.vector_store %arg4[%c0_5, %c0_6], %7 {strides = array<i32>} : memref<8x8xf32, #tpu.memory_space<vmem>>, vector<8x8xf32>,
    %c0_i32_7 = arith.constant 0 : i32
    %9 = arith.cmpi eq, %arg1, %c0_i32_7 : i32
    %10 = arith.extui %9 : i1 to i32
    %c0_i32_8 = arith.constant 0 : i32
    %11 = arith.cmpi ne, %10, %c0_i32_8 : i32
    scf.if %11 {
      %c0_9 = arith.constant 0 : index
      %c0_10 = arith.constant 0 : index
      %12 = vector.load %arg4[%c0_9, %c0_10] : memref<8x8xf32, #tpu.memory_space<vmem>>, vector<8x8xf32>
      %cst_11 = arith.constant dense<0x7F800000> : vector<8xf32>
      %13 = vector.multi_reduction <minimumf>, %12, %cst_11 [1] : vector<8x8xf32> to vector<8xf32>
      %14 = vector.shape_cast %13 : vector<8xf32> to vector<8x1xf32>
      %15 = vector.broadcast %14 : vector<8x1xf32> to vector<8x8xf32>
      %16 = arith.subf %15, %12 : vector<8x8xf32>
      %17 = math.exp %16 : vector<8x8xf32>
      %cst_12 = arith.constant dense<0.000000e+00> : vector<8xf32>
      %18 = vector.multi_reduction <add>, %17, %cst_12 [1] : vector<8x8xf32> to vector<8xf32>
      %19 = vector.shape_cast %18 : vector<8xf32> to vector<8x1xf32>
      %20 = tpu.reciprocal %19 : vector<8x1xf32> -> vector<8x1xf32>
      %21 = vector.broadcast %20 : vector<8x1xf32> to vector<8x8xf32>
      %22 = arith.mulf %17, %21 : vector<8x8xf32>
      %c0_13 = arith.constant 0 : index
      %c0_14 = arith.constant 0 : index
      %c0_15 = arith.constant 0 : index
      %23 = vector.load %arg3[%c0_13, %c0_14, %c0_15] : memref<1x8x8xf32, #tpu.memory_space<vmem>>, vector<1x8x8xf32>
      %24 = vector.shape_cast %23 : vector<1x8x8xf32> to vector<8x8xf32>
      %25 = vector.shape_cast %22 : vector<8x8xf32> to vector<1x8x8xf32>
      tpu.vector_store %arg3[%c0_13, %c0_14, %c0_15], %25 {strides = array<i32>} : memref<1x8x8xf32, #tpu.memory_space<vmem>>, vector<1x8x8xf32>,
    } else {
    }
    return
  }
  func.func @transform_0(%arg0: i32, %arg1: i32) -> (i32, i32, i32) {
    %c0_i32 = arith.constant 0 : i32
    %c0_i32_0 = arith.constant 0 : i32
    return %arg0, %c0_i32, %arg1 : i32, i32, i32
  }
  func.func @transform_1(%arg0: i32, %arg1: i32) -> (i32, i32, i32) {
    %c0_i32 = arith.constant 0 : i32
    %c0_i32_0 = arith.constant 0 : i32
    %c0_i32_1 = arith.constant 0 : i32
    return %arg0, %c0_i32, %c0_i32_0 : i32, i32, i32
  }
}

module attributes {stable_mosaic.version = 11 : i64} {
  func.func @_sab_attn_kernel(%arg0: i32, %arg1: memref<1xf32, #tpu.memory_space<smem>>, %arg2: memref<1x256x1xf32, #tpu.memory_space<vmem>>, %arg3: memref<1x1x256xf32, #tpu.memory_space<vmem>>, %arg4: memref<1x8x256xf32, #tpu.memory_space<vmem>>, %arg5: memref<8x8xf32, #tpu.memory_space<vmem>>, %arg6: memref<8x1xf32, #tpu.memory_space<vmem>>, %arg7: memref<1x8x256xf32, #tpu.memory_space<vmem>>) attributes {dimension_semantics = [#tpu.dimension_semantics<parallel>], iteration_bounds = array<i64: 2>, scalar_prefetch = 0 : i64, scratch_operands = 0 : i64, tpu.core_type = #tpu.core_type<tc>, window_params = [{transform_indices = @transform_0, window_bounds = array<i64: 1>}, {transform_indices = @transform_1, window_bounds = array<i64: 1, 256, 1>}, {transform_indices = @transform_2, window_bounds = array<i64: 1, 1, 256>}, {transform_indices = @transform_3, window_bounds = array<i64: 1, 8, 256>}, {pipeline_mode = #tpu.pipeline_mode<synchronous>, transform_indices = @transform_4, window_bounds = array<i64: 8, 8>}, {pipeline_mode = #tpu.pipeline_mode<synchronous>, transform_indices = @transform_5, window_bounds = array<i64: 8, 1>}, {transform_indices = @transform_6, window_bounds = array<i64: 1, 8, 256>}]} {
    %c0 = arith.constant 0 : index
    %0 = memref.load %arg1[%c0] : memref<1xf32, #tpu.memory_space<smem>>
    %c0_0 = arith.constant 0 : index
    %c0_1 = arith.constant 0 : index
    %c0_2 = arith.constant 0 : index
    %1 = vector.load %arg2[%c0_0, %c0_1, %c0_2] : memref<1x256x1xf32, #tpu.memory_space<vmem>>, vector<1x256x1xf32>
    %2 = vector.shape_cast %1 : vector<1x256x1xf32> to vector<256x1xf32>
    %c0_3 = arith.constant 0 : index
    %c0_4 = arith.constant 0 : index
    %c0_5 = arith.constant 0 : index
    %3 = vector.load %arg3[%c0_3, %c0_4, %c0_5] : memref<1x1x256xf32, #tpu.memory_space<vmem>>, vector<1x1x256xf32>
    %4 = vector.shape_cast %3 : vector<1x1x256xf32> to vector<1x256xf32>
    %5 = vector.broadcast %2 : vector<256x1xf32> to vector<256x256xf32>
    %6 = vector.broadcast %4 : vector<1x256xf32> to vector<256x256xf32>
    %7 = arith.mulf %5, %6 : vector<256x256xf32>
    %cst = arith.constant dense<0xFF800000> : vector<256xf32>
    %8 = vector.multi_reduction <maximumf>, %7, %cst [1] : vector<256x256xf32> to vector<256xf32>
    %9 = vector.shape_cast %8 : vector<256xf32> to vector<256x1xf32>
    %10 = vector.broadcast %9 : vector<256x1xf32> to vector<256x256xf32>
    %11 = arith.subf %7, %10 : vector<256x256xf32>
    %12 = math.exp %11 : vector<256x256xf32>
    %cst_6 = arith.constant dense<0.000000e+00> : vector<256xf32>
    %13 = vector.multi_reduction <add>, %12, %cst_6 [1] : vector<256x256xf32> to vector<256xf32>
    %14 = vector.shape_cast %13 : vector<256xf32> to vector<256x1xf32>
    %15 = tpu.reciprocal %14 : vector<256x1xf32> -> vector<256x1xf32>
    %16 = vector.broadcast %15 : vector<256x1xf32> to vector<256x256xf32>
    %17 = arith.mulf %12, %16 : vector<256x256xf32>
    %c0_7 = arith.constant 0 : index
    %c0_8 = arith.constant 0 : index
    %c0_9 = arith.constant 0 : index
    %18 = vector.load %arg4[%c0_7, %c0_8, %c0_9] : memref<1x8x256xf32, #tpu.memory_space<vmem>>, vector<1x8x256xf32>
    %19 = vector.shape_cast %18 : vector<1x8x256xf32> to vector<8x256xf32>
    %c0_10 = arith.constant 0 : index
    %c0_11 = arith.constant 0 : index
    %20 = vector.load %arg5[%c0_10, %c0_11] : memref<8x8xf32, #tpu.memory_space<vmem>>, vector<8x8xf32>
    %cst_12 = arith.constant dense<0.000000e+00> : vector<8x256xf32>
    %21 = tpu.matmul %20, %19, %cst_12 {dimension_numbers = #tpu.dot_dimension_numbers<[1], [0], [0], [1], [0, 0, 1, 1], [], []>} : vector<8x8xf32>, vector<8x256xf32>, vector<8x256xf32> -> vector<8x256xf32>
    %c0_13 = arith.constant 0 : index
    %c0_14 = arith.constant 0 : index
    %22 = vector.load %arg6[%c0_13, %c0_14] : memref<8x1xf32, #tpu.memory_space<vmem>>, vector<8x1xf32>
    %23 = vector.broadcast %22 : vector<8x1xf32> to vector<8x256xf32>
    %24 = arith.addf %21, %23 : vector<8x256xf32>
    %cst_15 = arith.constant dense<0.000000e+00> : vector<8x256xf32>
    %25 = tpu.matmul %24, %17, %cst_15 {dimension_numbers = #tpu.dot_dimension_numbers<[1], [1], [0], [0], [0, 0, 1, 0], [], []>} : vector<8x256xf32>, vector<256x256xf32>, vector<8x256xf32> -> vector<8x256xf32>
    %26 = vector.broadcast %0 : f32 to vector<8x256xf32>
    %27 = arith.mulf %26, %25 : vector<8x256xf32>
    %c0_16 = arith.constant 0 : index
    %c0_17 = arith.constant 0 : index
    %c0_18 = arith.constant 0 : index
    %28 = vector.load %arg7[%c0_16, %c0_17, %c0_18] : memref<1x8x256xf32, #tpu.memory_space<vmem>>, vector<1x8x256xf32>
    %29 = vector.shape_cast %28 : vector<1x8x256xf32> to vector<8x256xf32>
    %30 = vector.shape_cast %27 : vector<8x256xf32> to vector<1x8x256xf32>
    tpu.vector_store %arg7[%c0_16, %c0_17, %c0_18], %30 {strides = array<i32>} : memref<1x8x256xf32, #tpu.memory_space<vmem>>, vector<1x8x256xf32>,
    return
  }
  func.func @transform_0(%arg0: i32) -> i32 {
    %c0_i32 = arith.constant 0 : i32
    %c0_i32_0 = arith.constant 0 : i32
    return %c0_i32 : i32
  }
  func.func @transform_1(%arg0: i32) -> (i32, i32, i32) {
    %c0_i32 = arith.constant 0 : i32
    %c0_i32_0 = arith.constant 0 : i32
    %c0_i32_1 = arith.constant 0 : i32
    return %arg0, %c0_i32, %c0_i32_0 : i32, i32, i32
  }
  func.func @transform_2(%arg0: i32) -> (i32, i32, i32) {
    %c0_i32 = arith.constant 0 : i32
    %c0_i32_0 = arith.constant 0 : i32
    %c0_i32_1 = arith.constant 0 : i32
    return %arg0, %c0_i32, %c0_i32_0 : i32, i32, i32
  }
  func.func @transform_3(%arg0: i32) -> (i32, i32, i32) {
    %c0_i32 = arith.constant 0 : i32
    %c0_i32_0 = arith.constant 0 : i32
    %c0_i32_1 = arith.constant 0 : i32
    return %arg0, %c0_i32, %c0_i32_0 : i32, i32, i32
  }
  func.func @transform_4(%arg0: i32) -> (i32, i32) {
    %c0_i32 = arith.constant 0 : i32
    %c0_i32_0 = arith.constant 0 : i32
    %c0_i32_1 = arith.constant 0 : i32
    return %c0_i32, %c0_i32_0 : i32, i32
  }
  func.func @transform_5(%arg0: i32) -> (i32, i32) {
    %c0_i32 = arith.constant 0 : i32
    %c0_i32_0 = arith.constant 0 : i32
    %c0_i32_1 = arith.constant 0 : i32
    return %c0_i32, %c0_i32_0 : i32, i32
  }
  func.func @transform_6(%arg0: i32) -> (i32, i32, i32) {
    %c0_i32 = arith.constant 0 : i32
    %c0_i32_0 = arith.constant 0 : i32
    %c0_i32_1 = arith.constant 0 : i32
    return %arg0, %c0_i32, %c0_i32_0 : i32, i32, i32
  }
}

module attributes {stable_mosaic.version = 11 : i64} {
  func.func @_cab_apply_kernel(%arg0: i32, %arg1: i32, %arg2: memref<1xf32, #tpu.memory_space<smem>>, %arg3: memref<1x8x8xf32, #tpu.memory_space<vmem>>, %arg4: memref<1x8x256xf32, #tpu.memory_space<vmem>>, %arg5: memref<1x8x256xf32, #tpu.memory_space<vmem>>, %arg6: memref<1x8x256xf32, #tpu.memory_space<vmem>>) attributes {dimension_semantics = [#tpu.dimension_semantics<parallel>, #tpu.dimension_semantics<parallel>], iteration_bounds = array<i64: 2, 1>, scalar_prefetch = 0 : i64, scratch_operands = 0 : i64, tpu.core_type = #tpu.core_type<tc>, window_params = [{transform_indices = @transform_0, window_bounds = array<i64: 1>}, {transform_indices = @transform_1, window_bounds = array<i64: 1, 8, 8>}, {transform_indices = @transform_2, window_bounds = array<i64: 1, 8, 256>}, {transform_indices = @transform_3, window_bounds = array<i64: 1, 8, 256>}, {transform_indices = @transform_4, window_bounds = array<i64: 1, 8, 256>}]} {
    %c0 = arith.constant 0 : index
    %0 = memref.load %arg2[%c0] : memref<1xf32, #tpu.memory_space<smem>>
    %c0_0 = arith.constant 0 : index
    %c0_1 = arith.constant 0 : index
    %c0_2 = arith.constant 0 : index
    %1 = vector.load %arg4[%c0_0, %c0_1, %c0_2] : memref<1x8x256xf32, #tpu.memory_space<vmem>>, vector<1x8x256xf32>
    %2 = vector.shape_cast %1 : vector<1x8x256xf32> to vector<8x256xf32>
    %c0_3 = arith.constant 0 : index
    %c0_4 = arith.constant 0 : index
    %c0_5 = arith.constant 0 : index
    %3 = vector.load %arg3[%c0_3, %c0_4, %c0_5] : memref<1x8x8xf32, #tpu.memory_space<vmem>>, vector<1x8x8xf32>
    %4 = vector.shape_cast %3 : vector<1x8x8xf32> to vector<8x8xf32>
    %cst = arith.constant dense<0.000000e+00> : vector<8x256xf32>
    %5 = tpu.matmul %4, %2, %cst {dimension_numbers = #tpu.dot_dimension_numbers<[1], [0], [0], [1], [0, 0, 1, 1], [], []>} : vector<8x8xf32>, vector<8x256xf32>, vector<8x256xf32> -> vector<8x256xf32>
    %6 = vector.broadcast %0 : f32 to vector<8x256xf32>
    %7 = arith.mulf %6, %5 : vector<8x256xf32>
    %cst_6 = arith.constant 2.000000e+00 : f32
    %8 = vector.broadcast %cst_6 : f32 to vector<8x256xf32>
    %9 = arith.mulf %8, %2 : vector<8x256xf32>
    %10 = arith.addf %7, %9 : vector<8x256xf32>
    %c0_7 = arith.constant 0 : index
    %c0_8 = arith.constant 0 : index
    %c0_9 = arith.constant 0 : index
    %11 = vector.load %arg5[%c0_7, %c0_8, %c0_9] : memref<1x8x256xf32, #tpu.memory_space<vmem>>, vector<1x8x256xf32>
    %12 = vector.shape_cast %11 : vector<1x8x256xf32> to vector<8x256xf32>
    %13 = arith.addf %10, %12 : vector<8x256xf32>
    %c0_10 = arith.constant 0 : index
    %c0_11 = arith.constant 0 : index
    %c0_12 = arith.constant 0 : index
    %14 = vector.load %arg6[%c0_10, %c0_11, %c0_12] : memref<1x8x256xf32, #tpu.memory_space<vmem>>, vector<1x8x256xf32>
    %15 = vector.shape_cast %14 : vector<1x8x256xf32> to vector<8x256xf32>
    %16 = vector.shape_cast %13 : vector<8x256xf32> to vector<1x8x256xf32>
    tpu.vector_store %arg6[%c0_10, %c0_11, %c0_12], %16 {strides = array<i32>} : memref<1x8x256xf32, #tpu.memory_space<vmem>>, vector<1x8x256xf32>,
    return
  }
  func.func @transform_0(%arg0: i32, %arg1: i32) -> i32 {
    %c0_i32 = arith.constant 0 : i32
    %c0_i32_0 = arith.constant 0 : i32
    return %c0_i32 : i32
  }
  func.func @transform_1(%arg0: i32, %arg1: i32) -> (i32, i32, i32) {
    %c0_i32 = arith.constant 0 : i32
    %c0_i32_0 = arith.constant 0 : i32
    %c0_i32_1 = arith.constant 0 : i32
    return %arg0, %c0_i32, %c0_i32_0 : i32, i32, i32
  }
  func.func @transform_2(%arg0: i32, %arg1: i32) -> (i32, i32, i32) {
    %c0_i32 = arith.constant 0 : i32
    %c0_i32_0 = arith.constant 0 : i32
    return %arg0, %c0_i32, %arg1 : i32, i32, i32
  }
  func.func @transform_3(%arg0: i32, %arg1: i32) -> (i32, i32, i32) {
    %c0_i32 = arith.constant 0 : i32
    %c0_i32_0 = arith.constant 0 : i32
    return %arg0, %c0_i32, %arg1 : i32, i32, i32
  }
  func.func @transform_4(%arg0: i32, %arg1: i32) -> (i32, i32, i32) {
    %c0_i32 = arith.constant 0 : i32
    %c0_i32_0 = arith.constant 0 : i32
    return %arg0, %c0_i32, %arg1 : i32, i32, i32
  }
}

</mosaic_0001>

<bundles_post_ra>
// kernel: affinity_attention.4
= control target key start
LH: loop header
LB: loop body
LE: loop exit
PB: predicated region body
PF: predicated region fallthrough
CT: control target
= control target key end

     0   :  { %s383_s6 = smov 0   ;;  %s385_s7 = smov 0   ;;  %s425_s0 = inlined_call_operand.vmem [shape: f32[2,8,256], index: 0, kind: input, shape index: {}]   ;;  %s426_s1 = inlined_call_operand.vmem [shape: f32[2,8,8], index: 1, kind: output, shape index: {}]  }
   0x1   :  { %s387_s8 = smov 0  }
   0x2 LB: > { %s23_s9 = sadd.s32 1, %s366_s7  ;;  %p312_p0 = scmp.ge.s32.totalorder %s370_s8, 1  ;;  %s370_s8 = sphi %s387_s8, %s11_s8   ;;  %s366_s7 = sphi %s385_s7, %s428_s7   ;;  %s362_s6 = sphi %s383_s6, %s427_s6  }
   0x3   : > { %p25_p1 = scmp.ge.s32.totalorder %s23_s9, 2  ;;  %p106_p2 = scmp.lt.s32.totalorder %s370_s8, 3 }
   0x5   : > { %s430_s9 = smov (%p25_p1, %s23_s9), 0  ;;  %p107_p3 = pnand %p312_p0, %p106_p2 }
   0x6   : > { %p130_p4 = scmp.lt.s32.totalorder (!%p107_p3), %s362_s6, 1  ;;  %vm147_vm0 = vcmask (!%p107_p3), 64512   ;;  %v372_v0 = vmov (!%p107_p3), 0.0  }
   0x7   : > { %110 = sbr.rel (%p107_p3) target bundleno = 559 (0x22f), region = 24  ;;  %148 = vst.msk [vmem:[#allocation2] sm:$0xff] (!%p107_p3), %vm147_vm0, %v372_v0 }
   0xe   : > { %s432_s6 = smov (!%p130_p4, %s362_s6), 1  ;;  %v151_v3 = vld [vmem:[#allocation2] sm:$0xff] }
   0xf   : > { %s318_s10 = sshll.u32 %s432_s6, 4  ;;  %s315_s14 = sshll.u32 %s432_s6, 3 }
  0x10   : > { %s137_s13 = scalar_lea.vmem %s425_s0, %s318_s10  ;;  %s142_s17 = scalar_lea.vmem %s426_s1, %s315_s14 }
  0x11   : > { %v150_v1 = vld [vmem:[%s137_s13 + $0x8] sm:$0xff]  ;;  %v149_v2 = vld [vmem:[%s137_s13] sm:$0xff] }
  0x12   : > { %152 = vmatprep.subr.mxu0 %v150_v1  ;;  %216 = vmatprep.mubr.f32.mxu0 %v150_v1 }
  0x13   : > { %153 = vmatpush1.xpose.msra.mxu0 %v149_v2 }
  0x16   : > { %217 = vmatmul.mubr.f32.vlgmr.msra.gmra.mrb[0].mxu0 %v149_v2 }
  0xe9   : > { %v218_v4 = vpop.f32.mrb[0].mxu0 }
  0xea   : > { %v222_v5 = vadd.f32 %v218_v4, %v151_v3  ;;  %v220_v6 = vpop.f32.mrb[1].mxu0 }
  0xec   : > { %224 = vst.msk [vmem:[#allocation2] sm:$0xff] %vm147_vm0, %v222_v5 }
  0xf3   : > { %v228_v7 = vld [vmem:[#allocation2] sm:$0xff] }
  0xf4   : > { %v229_v8 = vsel %vm147_vm0, %v228_v7, inf }
  0xf5   : > { %230 = vmin.xlane.f32.xlu0 %v229_v8 }
 0x182   : > { %v231_v9 = vpop.xlane.xlu0 %230 }
 0x183   : > { %v232_v10 = vsub.f32 %v231_v9, %v228_v7 }
 0x185   : > { %v233_v11 = vmul.f32 1.442695, %v232_v10 }
 0x187   : > { %344 = vpow2.f32 %v233_v11 }
 0x191   : > { %v345_v12 = vpop.eup %344 }
 0x192   : > { %v235_v13 = vsel %vm147_vm0, %v345_v12, 0.0 }
 0x193   : > { %236 = vadd.xlane.f32.xlu0 %v235_v13 }
 0x220   : > { %v237_v14 = vpop.xlane.xlu0 %236 }
 0x221   : > { %346 = vrcp.f32 %v237_v14 }
 0x22b   : > { %v347_v15 = vpop.eup %346 }
 0x22c   : > { %v239_v16 = vmul.f32 %v347_v15, %v345_v12 }
 0x22e   : > { %240 = vst.msk [vmem:[%s142_s17] sm:$0xff] %vm147_vm0, %v239_v16 }
 0x22f PF: > { %s11_s8 = sadd.s32 1, %s370_s8   ;;  %s427_s6 = smov %s366_s7 }
 0x230   : > { %p8_p5 = scmp.ge.s32.totalorder %s11_s8, 4   ;;  %s428_s7 = smov %s430_s9 }
 0x232   :  { %10 = sbr.rel (!%p8_p5) target bundleno = 2 (0x2), region = 62 }

// kernel: affinity_attention.5
= control target key start
LH: loop header
LB: loop body
LE: loop exit
PB: predicated region body
PF: predicated region fallthrough
CT: control target
= control target key end

     0   :  { %s596_s17 = smov 0   ;;  %s598_s18 = smov 0   ;;  %s635_s0 = inlined_call_operand.<no memory space> [shape: f32[1], index: 0, kind: input, shape index: {}]   ;;  %s636_s1 = inlined_call_operand.vmem [shape: f32[2,8,8], index: 1, kind: input, shape index: {}]   ;;  %s637_s2 = inlined_call_operand.vmem [shape: f32[2,8,256], index: 2, kind: input, shape index: {}]   ;;  %s638_s3 = inlined_call_operand.vmem [shape: f32[2,8,256], index: 3, kind: input, shape index: {}]   ;;  %s639_s4 = inlined_call_operand.vmem [shape: f32[2,8,256], index: 4, kind: output, shape index: {}]  }
   0x1   :  { %9 = sst [smem:[#allocation2]] %s635_s0  ;;  %s600_s19 = smov 0  }
   0x2 LB: > { %s27_s0 = sadd.s32 1, %s561_s18  ;;  %p504_p0 = scmp.ge.s32.totalorder %s565_s19, 1  ;;  %s565_s19 = sphi %s600_s19, %s15_s19   ;;  %s561_s18 = sphi %s598_s18, %s641_s18   ;;  %s557_s17 = sphi %s596_s17, %s640_s17  }
   0x3   : > { %p29_p1 = scmp.ge.s32.totalorder %s27_s0, 2  ;;  %p210_p2 = scmp.lt.s32.totalorder %s565_s19, 3 }
   0x5   : > { %s643_s0 = smov (%p29_p1, %s27_s0), 0  ;;  %p211_p3 = pnand %p504_p0, %p210_p2 }
   0x6   : > { %p257_p4 = scmp.lt.s32.totalorder (!%p211_p3), %s557_s17, 1  ;;  %v567_v0 = vmov (!%p211_p3), 0.0   ;;  %vm295_vm0 = vcmask (!%p211_p3), 64512   ;;  %s291_s28 = sld [smem:[#allocation2]] (!%p211_p3) }
   0x7   : > { %214 = sbr.rel (%p211_p3) target bundleno = 240 (0xf0), region = 36  ;;  %363 = vmatprep.mubr.f32.mxu0 (!%p211_p3), %v567_v0 }
   0xc   : > { %v370_v4 = vstv (!%p211_p3), %s291_s28 }
   0xe   : > { %s645_s17 = smov (!%p257_p4, %s557_s17), 1 }
   0xf   : > { %s515_s20 = sshll.u32 %s645_s17, 4  ;;  %s505_s21 = sshll.u32 %s645_s17, 3 }
  0x10   : > { %s269_s24 = scalar_lea.vmem %s637_s2, %s515_s20  ;;  %s260_s27 = scalar_lea.vmem %s636_s1, %s505_s21 }
  0x11   : > { %v293_v1 = vld [vmem:[%s269_s24 + $0x8] sm:$0xff]  ;;  %v292_v2 = vld [vmem:[%s269_s24] sm:$0xff]  ;;  %s279_s5 = scalar_lea.vmem %s638_s3, %s515_s20  ;;  %s289_s8 = scalar_lea.vmem %s639_s4, %s515_s20 }
  0x12   : > { %299 = vmatprep.subr.mxu0 %v293_v1  ;;  %v294_v3 = vld [vmem:[%s260_s27] sm:$0xff]  ;;  %v373_v5 = vmul.f32 2.0, %v292_v2  ;;  %v374_v6 = vmul.f32 2.0, %v293_v1  ;;  %v378_v13 = vld [vmem:[%s279_s5 + $0x8] sm:$0xff] }
  0x13   : > { %300 = vmatpush1.msra.mxu0 %v292_v2  ;;  %v377_v10 = vld [vmem:[%s279_s5] sm:$0xff] }
  0x14   : > { %512 = vmatmul.mubr.msk.f32.vlgmr.msra.gmra.mrb[0].mxu0 %vm295_vm0, %v294_v3 }
  0xe7   : > { %v365_v7 = vpop.f32.mrb[0].mxu0 }
  0xe8   : > { %v371_v8 = vmul.f32 %v370_v4, %v365_v7  ;;  %v367_v9 = vpop.f32.mrb[1].mxu0 }
  0xe9   : > { %v372_v11 = vmul.f32 %v370_v4, %v367_v9 }
  0xea   : > { %v375_v12 = vadd.f32 %v373_v5, %v371_v8 }
  0xeb   : > { %v376_v14 = vadd.f32 %v374_v6, %v372_v11 }
  0xec   : > { %v379_v15 = vadd.f32 %v377_v10, %v375_v12 }
  0xed   : > { %v380_v16 = vadd.f32 %v378_v13, %v376_v14 }
  0xee   : > { %381 = vst [vmem:[%s289_s8] sm:$0xff] %v379_v15 }
  0xef   : > { %382 = vst [vmem:[%s289_s8 + $0x8] sm:$0xff] %v380_v16 }
  0xf0 PF: > { %s15_s19 = sadd.s32 1, %s565_s19   ;;  %s640_s17 = smov %s561_s18 }
  0xf1   : > { %p12_p5 = scmp.ge.s32.totalorder %s15_s19, 4   ;;  %s641_s18 = smov %s643_s0 }
  0xf3   :  { %14 = sbr.rel (!%p12_p5) target bundleno = 2 (0x2), region = 72 }

// kernel: affinity_attention.3
= control target key start
LH: loop header
LB: loop body
LE: loop exit
PB: predicated region body
PF: predicated region fallthrough
CT: control target
= control target key end

     0   :  { %s1612_s23 = smov 0   ;;  %s2301_s0 = inlined_call_operand.<no memory space> [shape: f32[1], index: 0, kind: input, shape index: {}]   ;;  %s2302_s1 = inlined_call_operand.vmem [shape: f32[2,256,1], index: 1, kind: input, shape index: {}]   ;;  %s2303_s2 = inlined_call_operand.vmem [shape: f32[2,1,256], index: 2, kind: input, shape index: {}]   ;;  %s2304_s3 = inlined_call_operand.vmem [shape: f32[2,8,256], index: 3, kind: input, shape index: {}]   ;;  %s2305_s4 = inlined_call_operand.vmem [shape: f32[8,8], index: 4, kind: input, shape index: {}]   ;;  %s2306_s5 = inlined_call_operand.vmem [shape: f32[8,1], index: 5, kind: input, shape index: {}]   ;;  %s2307_s6 = inlined_call_operand.vmem [shape: f32[2,8,256], index: 6, kind: output, shape index: {}]  }
   0x1   :  { %11 = sst [smem:[#allocation2]] %s2301_s0 }
   0x2 LB: > { %s1278_s24 = sadd.s32 4294967295, %s1570_s23   ;;  %p1282_p0 = scmp.ge.s32.totalorder %s1570_s23, 1  ;;  %s1570_s23 = sphi %s1612_s23, %s17_s23  }
   0x3   : > { %p232_p1 = scmp.lt.s32.totalorder %s1570_s23, 3 }
   0x5   : > { %p233_p2 = pnand %p1282_p0, %p232_p1 }
   0x7   : > { %236 = sbr.rel (%p233_p2) target bundleno = 956 (0x3bc), region = 44 }
   0xe   : > { %p271_p3 = scmp.lt.s32.totalorder %s1278_s24, 1  ;;  %v1572_v0 = vmov 0   ;;  %v485_v16 = vlaneseq  ;;  %vm1048_vm0 = vcmask 64512   ;;  %s290_s16 = sld [smem:[#allocation2]] }
   0xf   : > { %1371 = vset.pattern.permute.xlu1 %v1572_v0  ;;  %1370 = vset.pattern.permute.xlu0 %v1572_v0 }
  0x10   : > { %s2354_s24 = smov (!%p271_p3, %s1278_s24), 1  ;;  %v486_v17 = vshrl.u32 %v485_v16, 7 }
  0x11   : > { %s1293_s0 = sshll.u32 %s2354_s24, 8  ;;  %s1285_s28 = sshll.u32 %s2354_s24, 1 }
  0x12   : > { %s1626_s27 = scalar_lea.vmem %s2302_s1, %s1293_s0  ;;  %s279_s7 = scalar_lea.vmem %s2303_s2, %s1285_s28  ;;  %v487_v18 = vsub.s32 0, %v486_v17  ;;  %v491_v19 = vsub.s32 1, %v486_v17 }
  0x13   : > { %v293_v1 = vld [vmem:[%s1626_s27 + $0x10] sm:$0xff]  ;;  %v291_v2 = vld [vmem:[%s1626_s27] sm:$0xff]  ;;  %v294_v3 = vld [vmem:[%s1626_s27 + $0x18] sm:$0xff]  ;;  %s1294_s8 = sshll.u32 %s2354_s24, 4 }
  0x14   : > { %336 = vperm.xlu1 %1371, %v293_v1   ;;  %326 = vperm.xlu0 %1370, %v291_v2   ;;  %v292_v4 = vld [vmem:[%s1626_s27 + $0x8] sm:$0xff]  ;;  %v295_v6 = vld [vmem:[%s1626_s27 + $0x20] sm:$0xff]  ;;  %v298_v7 = vld [vmem:[%s1626_s27 + $0x38] sm:$0xff]  ;;  %s284_s11 = scalar_lea.vmem %s2304_s3, %s1294_s8  ;;  %s289_s19 = scalar_lea.vmem %s2307_s6, %s1294_s8 }
  0x15   : > { %v296_v5 = vld [vmem:[%s1626_s27 + $0x28] sm:$0xff]  ;;  %v297_v8 = vld [vmem:[%s1626_s27 + $0x30] sm:$0xff]  ;;  %v299_v10 = vld [vmem:[%s1626_s27 + $0x40] sm:$0xff] }
  0x16   : > { %v300_v9 = vld [vmem:[%s1626_s27 + $0x48] sm:$0xff]  ;;  %v302_v11 = vld [vmem:[%s1626_s27 + $0x58] sm:$0xff]  ;;  %v301_v12 = vld [vmem:[%s1626_s27 + $0x50] sm:$0xff] }
  0x17   : > { %v304_v13 = vld [vmem:[%s1626_s27 + $0x68] sm:$0xff]  ;;  %v303_v14 = vld [vmem:[%s1626_s27 + $0x60] sm:$0xff]  ;;  %v306_v15 = vld [vmem:[%s1626_s27 + $0x78] sm:$0xff] }
  0x18   : > { %341 = vperm.xlu1 %1371, %v294_v3   ;;  %331 = vperm.xlu0 %1370, %v292_v4   ;;  %v323_v20 = vld [vmem:[%s279_s7] sm:$0x3]  ;;  %v308_v63 = vld [vmem:[%s1626_s27 + $0x88] sm:$0xff]  ;;  %v310_v0 = vld [vmem:[%s1626_s27 + $0x98] sm:$0xff] }
  0x19   : > { %v1647_v21 = vrot.slane %v323_v20, %v487_v18  ;;  %v1649_v22 = vrot.slane %v323_v20, %v491_v19  ;;  %v312_v1 = vld [vmem:[%s1626_s27 + $0xa8] sm:$0xff]  ;;  %v314_v2 = vld [vmem:[%s1626_s27 + $0xb8] sm:$0xff]  ;;  %v305_v3 = vld [vmem:[%s1626_s27 + $0x70] sm:$0xff] }
  0x1a   : > { %v307_v4 = vld [vmem:[%s1626_s27 + $0x80] sm:$0xff]  ;;  %v321_v16 = vld [vmem:[%s1626_s27 + $0xf0] sm:$0xff] }
  0x1c   : > { %351 = vperm.xlu1 %1371, %v296_v5   ;;  %346 = vperm.xlu0 %1370, %v295_v6   ;;  %v309_v5 = vld [vmem:[%s1626_s27 + $0x90] sm:$0xff]  ;;  %v311_v6 = vld [vmem:[%s1626_s27 + $0xa0] sm:$0xff] }
  0x20   : > { %361 = vperm.xlu1 %1371, %v298_v7   ;;  %356 = vperm.xlu0 %1370, %v297_v8   ;;  %v313_v7 = vld [vmem:[%s1626_s27 + $0xb0] sm:$0xff] }
  0x24   : > { %371 = vperm.xlu1 %1371, %v300_v9   ;;  %366 = vperm.xlu0 %1370, %v299_v10   ;;  %v315_v9 = vld [vmem:[%s1626_s27 + $0xc0] sm:$0xff]  ;;  %v317_v10 = vld [vmem:[%s1626_s27 + $0xd0] sm:$0xff] }
  0x28   : > { %381 = vperm.xlu1 %1371, %v302_v11   ;;  %376 = vperm.xlu0 %1370, %v301_v12   ;;  %v319_v12 = vld [vmem:[%s1626_s27 + $0xe0] sm:$0xff] }
  0x2c   : > { %391 = vperm.xlu1 %1371, %v304_v13   ;;  %386 = vperm.xlu0 %1370, %v303_v14  }
  0x30   : > { %401 = vperm.xlu1 %1371, %v306_v15  }
  0x93   : > { %v337_v23 = vpop.permute.xlu1 %336  ;;  %v327_v24 = vpop.permute.xlu0 %326 }
  0x94   : > { %v1652_v25 = vmul.f32 %v1647_v21, %v337_v23  ;;  %v1655_v26 = vmul.f32 %v1649_v22, %v337_v23  ;;  %v1658_v27 = vmul.f32 %v1647_v21, %v327_v24  ;;  %v1661_v28 = vmul.f32 %v1649_v22, %v327_v24 }
  0x96   : > { %v559_v29 = vmax.f32 %v1658_v27, %v1661_v28  ;;  %v565_v34 = vmax.f32 %v1652_v25, %v1655_v26 }
  0x97   : > { %v342_v30 = vpop.permute.xlu1 %341  ;;  %v332_v31 = vpop.permute.xlu0 %331 }
  0x98   : > { %v1666_v32 = vmul.f32 %v1647_v21, %v332_v31  ;;  %v1669_v33 = vmul.f32 %v1649_v22, %v332_v31  ;;  %560 = vmax.xlane.f32.xlu0 %v559_v29  ;;  %v1676_v36 = vmul.f32 %v1647_v21, %v342_v30  ;;  %v1679_v37 = vmul.f32 %v1649_v22, %v342_v30 }
  0x9a   : > { %v562_v35 = vmax.f32 %v1666_v32, %v1669_v33  ;;  %v568_v46 = vmax.f32 %v1676_v36, %v1679_v37 }
  0x9b   : > { %v347_v38 = vpop.permute.xlu0 %346  ;;  %v352_v39 = vpop.permute.xlu1 %351 }
  0x9c   : > { %v1682_v40 = vmul.f32 %v1647_v21, %v347_v38  ;;  %v1685_v41 = vmul.f32 %v1649_v22, %v347_v38  ;;  %566 = vmax.xlane.f32.xlu0 %v565_v34  ;;  %563 = vmax.xlane.f32.xlu1 %v562_v35  ;;  %v1690_v43 = vmul.f32 %v1647_v21, %v352_v39  ;;  %v316_v38 = vld [vmem:[%s1626_s27 + $0xc8] sm:$0xff] }
  0x9d   : > { %v1693_v44 = vmul.f32 %v1649_v22, %v352_v39  ;;  %v318_v39 = vld [vmem:[%s1626_s27 + $0xd8] sm:$0xff] }
  0x9e   : > { %v571_v42 = vmax.f32 %v1682_v40, %v1685_v41 }
  0x9f   : > { %v357_v45 = vpop.permute.xlu0 %356  ;;  %v574_v51 = vmax.f32 %v1690_v43, %v1693_v44  ;;  %v362_v8 = vpop.permute.xlu1 %361 }
  0xa0   : > { %v1698_v47 = vmul.f32 %v1647_v21, %v357_v45  ;;  %v1701_v48 = vmul.f32 %v1649_v22, %v357_v45  ;;  %572 = vmax.xlane.f32.xlu0 %v571_v42  ;;  %569 = vmax.xlane.f32.xlu1 %v568_v46  ;;  %v1744_v13 = vmul.f32 %v1647_v21, %v362_v8  ;;  %v320_v42 = vld [vmem:[%s1626_s27 + $0xe8] sm:$0xff]  ;;  %v322_v45 = vld [vmem:[%s1626_s27 + $0xf8] sm:$0xff] }
  0xa1   : > { %v1747_v14 = vmul.f32 %v1649_v22, %v362_v8 }
  0xa2   : > { %v577_v49 = vmax.f32 %v1698_v47, %v1701_v48 }
  0xa3   : > { %v367_v50 = vpop.permute.xlu0 %366  ;;  %v372_v11 = vpop.permute.xlu1 %371  ;;  %v580_v19 = vmax.f32 %v1744_v13, %v1747_v14 }
  0xa4   : > { %v1708_v52 = vmul.f32 %v1647_v21, %v367_v50  ;;  %v1711_v53 = vmul.f32 %v1649_v22, %v367_v50  ;;  %578 = vmax.xlane.f32.xlu0 %v577_v49  ;;  %575 = vmax.xlane.f32.xlu1 %v574_v51  ;;  %v1751_v17 = vmul.f32 %v1647_v21, %v372_v11 }
  0xa5   : > { %v1754_v18 = vmul.f32 %v1649_v22, %v372_v11 }
  0xa6   : > { %v583_v54 = vmax.f32 %v1708_v52, %v1711_v53 }
  0xa7   : > { %v377_v55 = vpop.permute.xlu0 %376  ;;  %v382_v15 = vpop.permute.xlu1 %381  ;;  %v586_v24 = vmax.f32 %v1751_v17, %v1754_v18 }
  0xa8   : > { %v1716_v56 = vmul.f32 %v1647_v21, %v377_v55  ;;  %v1719_v57 = vmul.f32 %v1649_v22, %v377_v55  ;;  %584 = vmax.xlane.f32.xlu0 %v583_v54  ;;  %v1759_v20 = vmul.f32 %v1647_v21, %v382_v15  ;;  %v1762_v23 = vmul.f32 %v1649_v22, %v382_v15 }
  0xaa   : > { %v589_v58 = vmax.f32 %v1716_v56, %v1719_v57  ;;  %v592_v34 = vmax.f32 %v1759_v20, %v1762_v23 }
  0xab   : > { %v387_v59 = vpop.permute.xlu0 %386  ;;  %v392_v29 = vpop.permute.xlu1 %391 }
  0xac   : > { %v1724_v60 = vmul.f32 %v1647_v21, %v387_v59  ;;  %v1727_v61 = vmul.f32 %v1649_v22, %v387_v59  ;;  %590 = vmax.xlane.f32.xlu0 %v589_v58  ;;  %v1767_v30 = vmul.f32 %v1647_v21, %v392_v29  ;;  %v1770_v31 = vmul.f32 %v1649_v22, %v392_v29 }
  0xae   : > { %v595_v62 = vmax.f32 %v1724_v60, %v1727_v61  ;;  %v598_v35 = vmax.f32 %v1767_v30, %v1770_v31 }
  0xaf   : > { %v402_v50 = vpop.permute.xlu1 %401 }
  0xb0   : > { %596 = vmax.xlane.f32.xlu0 %v595_v62  ;;  %v1781_v51 = vmul.f32 %v1647_v21, %v402_v50  ;;  %v1784_v54 = vmul.f32 %v1649_v22, %v402_v50 }
  0xb2   : > { %v604_v62 = vmax.f32 %v1781_v51, %v1784_v54 }
  0xb5   : > { %411 = vperm.xlu1 %1371, %v308_v63  }
  0xb9   : > { %421 = vperm.xlu1 %1371, %v310_v0  }
  0xbd   : > { %431 = vperm.xlu1 %1371, %v312_v1  }
  0xc1   : > { %441 = vperm.xlu1 %1371, %v314_v2  }
  0xc6   : > { %396 = vperm.xlu0 %1370, %v305_v3  }
  0xca   : > { %406 = vperm.xlu0 %1370, %v307_v4  }
  0xce   : > { %416 = vperm.xlu0 %1370, %v309_v5  }
  0xd2   : > { %426 = vperm.xlu0 %1370, %v311_v6  }
  0xd6   : > { %436 = vperm.xlu0 %1370, %v313_v7  }
  0xda   : > { %446 = vperm.xlu0 %1370, %v315_v9  }
  0xde   : > { %456 = vperm.xlu0 %1370, %v317_v10  }
  0xe2   : > { %466 = vperm.xlu0 %1370, %v319_v12  }
  0xe5   : > { %581 = vmax.xlane.f32.xlu1 %v580_v19 }
  0xe6   : > { %476 = vperm.xlu0 %1370, %v321_v16  }
  0xe9   : > { %587 = vmax.xlane.f32.xlu1 %v586_v24 }
  0xed   : > { %593 = vmax.xlane.f32.xlu1 %v592_v34 }
  0xf1   : > { %599 = vmax.xlane.f32.xlu1 %v598_v35 }
 0x102   : > { %451 = vperm.xlu1 %1371, %v316_v38  }
 0x106   : > { %461 = vperm.xlu1 %1371, %v318_v39  }
 0x10a   : > { %471 = vperm.xlu1 %1371, %v320_v42  }
 0x10e   : > { %481 = vperm.xlu1 %1371, %v322_v45  }
 0x125   : > { %v561_v46 = vpop.xlane.xlu0 %560 }
 0x126   : > { %v655_v6 = vsub.f32 %v1658_v27, %v561_v46  ;;  %v656_v9 = vsub.f32 %v1661_v28, %v561_v46 }
 0x128   : > { %v719_v15 = vmul.f32 1.442695, %v655_v6  ;;  %v721_v24 = vmul.f32 1.442695, %v656_v9 }
 0x129   : > { %v567_v49 = vpop.xlane.xlu0 %566  ;;  %v564_v58 = vpop.xlane.xlu1 %563 }
 0x12a   : > { %v657_v16 = vsub.f32 %v1666_v32, %v564_v58  ;;  %v658_v29 = vsub.f32 %v1669_v33, %v564_v58  ;;  %v659_v32 = vsub.f32 %v1652_v25, %v567_v49  ;;  %1372 = vpow2.f32 %v719_v15 }
 0x12b   : > { %1374 = vpow2.f32 %v721_v24  ;;  %v660_v46 = vsub.f32 %v1655_v26, %v567_v49 }
 0x12c   : > { %v723_v39 = vmul.f32 1.442695, %v657_v16  ;;  %v725_v33 = vmul.f32 1.442695, %v658_v29  ;;  %v1573_v16 = vmov 0.0  }
 0x12d   : > { %v1786_v55 = vpop.xlane.xlu0 %572  ;;  %v1794_v0 = vpop.xlane.xlu1 %569  ;;  %v729_v49 = vmul.f32 1.442695, %v660_v46  ;;  %1116 = vmatprep.mubr.f32.mxu0 %v1573_v16  ;;  %v1041_v46 = vld [vmem:[%s2305_s4] sm:$0xff] }
 0x12e   : > { %1376 = vpow2.f32 %v723_v39 }
 0x12f   : > { %1378 = vpow2.f32 %v725_v33 }
 0x131   : > { %v1788_v59 = vpop.xlane.xlu0 %578  ;;  %v1798_v2 = vpop.xlane.xlu1 %575 }
 0x132   : > { %605 = vmax.xlane.f32.xlu1 %v604_v62 }
 0x135   : > { %v1792_v63 = vpop.xlane.xlu0 %584  ;;  %v412_v4 = vpop.permute.xlu1 %411 }
 0x136   : > { %v1821_v28 = vmul.f32 %v1647_v21, %v412_v4  ;;  %v1824_v34 = vmul.f32 %v1649_v22, %v412_v4 }
 0x138   : > { %v610_v62 = vmax.f32 %v1821_v28, %v1824_v34 }
 0x139   : > { %v1796_v1 = vpop.xlane.xlu0 %590  ;;  %v422_v11 = vpop.permute.xlu1 %421 }
 0x13a   : > { %v1837_v58 = vmul.f32 %v1647_v21, %v422_v11  ;;  %v1840_v25 = vmul.f32 %v1649_v22, %v422_v11 }
 0x13d   : > { %v1800_v3 = vpop.xlane.xlu0 %596  ;;  %v432_v50 = vpop.permute.xlu1 %431 }
 0x13e   : > { %v1857_v11 = vmul.f32 %v1649_v22, %v432_v50 }
 0x141   : > { %v442_v24 = vpop.permute.xlu1 %441 }
 0x145   : > { %v397_v5 = vpop.permute.xlu0 %396 }
 0x146   : > { %v1804_v7 = vmul.f32 %v1647_v21, %v397_v5  ;;  %v1807_v8 = vmul.f32 %v1649_v22, %v397_v5  ;;  %v727_v5 = vmul.f32 1.442695, %v659_v32  ;;  %v1039_v32 = vld [vmem:[%s284_s11] sm:$0xff] }
 0x148   : > { %v601_v10 = vmax.f32 %v1804_v7, %v1807_v8  ;;  %1380 = vpow2.f32 %v727_v5 }
 0x149   : > { %v407_v12 = vpop.permute.xlu0 %406  ;;  %1382 = vpow2.f32 %v729_v49 }
 0x14a   : > { %v1814_v19 = vmul.f32 %v1647_v21, %v407_v12  ;;  %v1817_v27 = vmul.f32 %v1649_v22, %v407_v12  ;;  %602 = vmax.xlane.f32.xlu0 %v601_v10  ;;  %v1854_v10 = vmul.f32 %v1647_v21, %v432_v50  ;;  %v616_v12 = vmax.f32 %v1837_v58, %v1840_v25 }
 0x14b   : > { %v664_v50 = vsub.f32 %v1685_v41, %v1786_v55 }
 0x14c   : > { %v607_v35 = vmax.f32 %v1814_v19, %v1817_v27  ;;  %v622_v5 = vmax.f32 %v1854_v10, %v1857_v11 }
 0x14d   : > { %v417_v38 = vpop.permute.xlu0 %416 }
 0x14e   : > { %v1830_v42 = vmul.f32 %v1647_v21, %v417_v38  ;;  %v1833_v45 = vmul.f32 %v1649_v22, %v417_v38  ;;  %608 = vmax.xlane.f32.xlu0 %v607_v35  ;;  %v1040_v35 = vld [vmem:[%s284_s11 + $0x8] sm:$0xff]  ;;  %v663_v38 = vsub.f32 %v1682_v40, %v1786_v55  ;;  %v1884_v40 = vmul.f32 %v1647_v21, %v442_v24 }
 0x14f   : > { %1052 = vmatprep.subr.mxu0 %v1040_v35  ;;  %v737_v55 = vmul.f32 1.442695, %v664_v50  ;;  %v668_v50 = vsub.f32 %v1701_v48, %v1788_v59 }
 0x150   : > { %v613_v4 = vmax.f32 %v1830_v42, %v1833_v45  ;;  %1053 = vmatpush1.msra.mxu0 %v1039_v32  ;;  %v735_v41 = vmul.f32 1.442695, %v663_v38  ;;  %v667_v38 = vsub.f32 %v1698_v47, %v1788_v59  ;;  %v671_v59 = vsub.f32 %v1708_v52, %v1792_v63 }
 0x151   : > { %v427_v6 = vpop.permute.xlu0 %426  ;;  %1290 = vmatmul.mubr.msk.f32.vlgmr.msra.gmra.mrb[0].mxu0 %vm1048_vm0, %v1041_v46  ;;  %v745_v47 = vmul.f32 1.442695, %v668_v50  ;;  %v676_v52 = vsub.f32 %v1719_v57, %v1796_v1  ;;  %v680_v57 = vsub.f32 %v1727_v61, %v1800_v3 }
 0x152   : > { %v1847_v9 = vmul.f32 %v1647_v21, %v427_v6  ;;  %v1850_v26 = vmul.f32 %v1649_v22, %v427_v6  ;;  %611 = vmax.xlane.f32.xlu0 %v610_v62  ;;  %614 = vmax.xlane.f32.xlu1 %v613_v4  ;;  %v1881_v62 = vpop.eup %1372  ;;  %v1887_v4 = vmul.f32 %v1649_v22, %v442_v24  ;;  %1384 = vpow2.f32 %v735_v41 }
 0x153   : > { %2323 = vst [vmem:[#allocation3_spill] sm:$0xff] %v1881_v62  ;;  %v1893_v49 = vpop.eup %1374  ;;  %1386 = vpow2.f32 %v737_v55 }
 0x154   : > { %v619_v15 = vmax.f32 %v1847_v9, %v1850_v26  ;;  %v847_v35 = vadd.f32 %v1893_v49, %v1881_v62  ;;  %v743_v62 = vmul.f32 1.442695, %v667_v38 }
 0x155   : > { %v437_v29 = vpop.permute.xlu0 %436 }
 0x156   : > { %v1871_v39 = vmul.f32 %v1647_v21, %v437_v29  ;;  %v1874_v33 = vmul.f32 %v1649_v22, %v437_v29  ;;  %617 = vmax.xlane.f32.xlu0 %v616_v12  ;;  %620 = vmax.xlane.f32.xlu1 %v619_v15  ;;  %v1895_v15 = vpop.eup %1376  ;;  %v628_v29 = vmax.f32 %v1884_v40, %v1887_v4  ;;  %1388 = vpow2.f32 %v743_v62 }
 0x157   : > { %v1907_v32 = vpop.eup %1378  ;;  %1390 = vpow2.f32 %v745_v47  ;;  %v675_v62 = vsub.f32 %v1716_v56, %v1796_v1  ;;  %v761_v56 = vmul.f32 1.442695, %v676_v52 }
 0x158   : > { %v625_v6 = vmax.f32 %v1871_v39, %v1874_v33  ;;  %v1911_v46 = vpop.eup %1380 }
 0x159   : > { %v447_v12 = vpop.permute.xlu0 %446  ;;  %2324 = vst [vmem:[#allocation4_spill] sm:$0xff] %v1911_v46 }
 0x15a   : > { %623 = vmax.xlane.f32.xlu0 %v622_v5  ;;  %626 = vmax.xlane.f32.xlu1 %v625_v6  ;;  %v1898_v16 = vmul.f32 %v1647_v21, %v447_v12  ;;  %v1901_v24 = vmul.f32 %v1649_v22, %v447_v12  ;;  %v850_v5 = vadd.f32 %v1907_v32, %v1895_v15  ;;  %v1919_v12 = vpop.eup %1382 }
 0x15b   : > { %v853_v48 = vadd.f32 %v1919_v12, %v1911_v46 }
 0x15c   : > { %v631_v6 = vmax.f32 %v1898_v16, %v1901_v24  ;;  %v1933_v38 = vpop.eup %1384 }
 0x15d   : > { %v457_v41 = vpop.permute.xlu0 %456 }
 0x15e   : > { %629 = vmax.xlane.f32.xlu0 %v628_v29  ;;  %848 = vadd.xlane.f32.xlu1 %v847_v35  ;;  %v1922_v29 = vmul.f32 %v1647_v21, %v457_v41  ;;  %v1925_v55 = vmul.f32 %v1649_v22, %v457_v41  ;;  %v672_v35 = vsub.f32 %v1711_v53, %v1792_v63  ;;  %v751_v41 = vmul.f32 1.442695, %v671_v59 }
 0x15f   : > { %v679_v59 = vsub.f32 %v1724_v60, %v1800_v3 }
 0x160   : > { %v637_v50 = vmax.f32 %v1922_v29, %v1925_v55  ;;  %v753_v46 = vmul.f32 1.442695, %v672_v35  ;;  %1392 = vpow2.f32 %v751_v41 }
 0x161   : > { %v767_v41 = vmul.f32 1.442695, %v679_v59 }
 0x162   : > { %851 = vadd.xlane.f32.xlu0 %v850_v5  ;;  %632 = vmax.xlane.f32.xlu1 %v631_v6  ;;  %v1937_v5 = vpop.eup %1386  ;;  %v467_v6 = vpop.permute.xlu0 %466  ;;  %1394 = vpow2.f32 %v753_v46  ;;  %v661_v46 = vsub.f32 %v1676_v36, %v1794_v0 }
 0x163   : > { %v1944_v47 = vmul.f32 %v1647_v21, %v467_v6  ;;  %v1947_v53 = vmul.f32 %v1649_v22, %v467_v6  ;;  %v859_v63 = vadd.f32 %v1937_v5, %v1933_v38  ;;  %v1955_v1 = vpop.eup %1388 }
 0x164   : > { %2325 = vst [vmem:[#allocation5_spill] sm:$0xff] %v1955_v1 }
 0x165   : > { %v643_v35 = vmax.f32 %v1944_v47, %v1947_v53 }
 0x166   : > { %854 = vadd.xlane.f32.xlu1 %v853_v48  ;;  %v759_v48 = vmul.f32 1.442695, %v675_v62  ;;  %v477_v6 = vpop.permute.xlu0 %476  ;;  %v769_v62 = vmul.f32 1.442695, %v680_v57 }
 0x167   : > { %v1964_v52 = vmul.f32 %v1647_v21, %v477_v6  ;;  %v1967_v61 = vmul.f32 %v1649_v22, %v477_v6  ;;  %v665_v6 = vsub.f32 %v1690_v43, %v1798_v2 }
 0x168   : > { %1396 = vpow2.f32 %v759_v48 }
 0x169   : > { %1398 = vpow2.f32 %v761_v56  ;;  %v731_v56 = vmul.f32 1.442695, %v661_v46  ;;  %v649_v36 = vmax.f32 %v1964_v52, %v1967_v61 }
 0x16a   : > { %638 = vmax.xlane.f32.xlu1 %v637_v50  ;;  %v1959_v50 = vpop.eup %1390  ;;  %1400 = vpow2.f32 %v767_v41  ;;  %v666_v41 = vsub.f32 %v1693_v44, %v1798_v2 }
 0x16b   : > { %2326 = vst [vmem:[#allocation6_spill] sm:$0xff] %v1959_v50  ;;  %v865_v3 = vadd.f32 %v1959_v50, %v1955_v1  ;;  %1402 = vpow2.f32 %v769_v62  ;;  %v1973_v59 = vpop.eup %1392  ;;  %v739_v62 = vmul.f32 1.442695, %v665_v6 }
 0x16c   : > { %2327 = vst [vmem:[#allocation7_spill] sm:$0xff] %v1973_v59  ;;  %v1977_v57 = vpop.eup %1394  ;;  %1404 = vpow2.f32 %v731_v56  ;;  %v741_v56 = vmul.f32 1.442695, %v666_v41 }
 0x16e   : > { %860 = vadd.xlane.f32.xlu1 %v859_v63  ;;  %v662_v63 = vsub.f32 %v1679_v37, %v1794_v0  ;;  %v871_v37 = vadd.f32 %v1977_v57, %v1973_v59 }
 0x172   : > { %644 = vmax.xlane.f32.xlu1 %v643_v35  ;;  %v582_v60 = vpop.xlane.xlu1 %581  ;;  %v733_v35 = vmul.f32 1.442695, %v662_v63  ;;  %v1981_v50 = vpop.eup %1396 }
 0x173   : > { %2328 = vst [vmem:[#allocation8_spill] sm:$0xff] %v1981_v50  ;;  %v1985_v0 = vpop.eup %1398  ;;  %v669_v59 = vsub.f32 %v1744_v13, %v582_v60  ;;  %v670_v6 = vsub.f32 %v1747_v14, %v582_v60 }
 0x174   : > { %2329 = vst [vmem:[#allocation9_spill] sm:$0xff] %v1985_v0  ;;  %1406 = vpow2.f32 %v733_v35  ;;  %v877_v43 = vadd.f32 %v1985_v0, %v1981_v50 }
 0x175   : > { %1408 = vpow2.f32 %v739_v62  ;;  %v749_v50 = vmul.f32 1.442695, %v670_v6 }
 0x176   : > { %866 = vadd.xlane.f32.xlu1 %v865_v3  ;;  %v588_v48 = vpop.xlane.xlu1 %587  ;;  %v1989_v3 = vpop.eup %1400  ;;  %1410 = vpow2.f32 %v741_v56 }
 0x177   : > { %2330 = vst [vmem:[#allocation10_spill] sm:$0xff] %v1989_v3  ;;  %v1993_v63 = vpop.eup %1402  ;;  %v673_v60 = vsub.f32 %v1751_v17, %v588_v48 }
 0x178   : > { %2331 = vst [vmem:[#allocation11_spill] sm:$0xff] %v1993_v63  ;;  %v883_v2 = vadd.f32 %v1993_v63, %v1989_v3 }
 0x17a   : > { %650 = vmax.xlane.f32.xlu1 %v649_v36  ;;  %v594_v1 = vpop.xlane.xlu1 %593 }
 0x17b   : > { %v677_v63 = vsub.f32 %v1759_v20, %v594_v1 }
 0x17e   : > { %872 = vadd.xlane.f32.xlu1 %v871_v37  ;;  %v600_v46 = vpop.xlane.xlu1 %599  ;;  %v2005_v37 = vpop.eup %1404 }
 0x17f   : > { %v2009_v62 = vpop.eup %1406 }
 0x180   : > { %v856_v14 = vadd.f32 %v2009_v62, %v2005_v37  ;;  %v2020_v56 = vpop.eup %1408 }
 0x181   : > { %v2025_v6 = vpop.eup %1410 }
 0x182   : > { %878 = vadd.xlane.f32.xlu1 %v877_v43  ;;  %v452_v36 = vpop.permute.xlu1 %451  ;;  %v747_v43 = vmul.f32 1.442695, %v669_v59  ;;  %v674_v59 = vsub.f32 %v1754_v18, %v588_v48  ;;  %v862_v18 = vadd.f32 %v2025_v6, %v2020_v56  ;;  %v763_v48 = vmul.f32 1.442695, %v677_v63 }
 0x183   : > { %v1997_v35 = vmul.f32 %v1647_v21, %v452_v36  ;;  %v2000_v44 = vmul.f32 %v1649_v22, %v452_v36 }
 0x184   : > { %1412 = vpow2.f32 %v747_v43  ;;  %v757_v0 = vmul.f32 1.442695, %v674_v59  ;;  %v678_v43 = vsub.f32 %v1762_v23, %v594_v1 }
 0x185   : > { %v634_v41 = vmax.f32 %v1997_v35, %v2000_v44  ;;  %1414 = vpow2.f32 %v749_v50 }
 0x186   : > { %884 = vadd.xlane.f32.xlu1 %v883_v2  ;;  %v462_v13 = vpop.permute.xlu1 %461  ;;  %v765_v20 = vmul.f32 1.442695, %v678_v43 }
 0x187   : > { %635 = vmax.xlane.f32.xlu0 %v634_v41  ;;  %v2012_v36 = vmul.f32 %v1647_v21, %v462_v13  ;;  %v2015_v3 = vmul.f32 %v1649_v22, %v462_v13  ;;  %v755_v13 = vmul.f32 1.442695, %v673_v60  ;;  %v682_v60 = vsub.f32 %v1770_v31, %v600_v46 }
 0x189   : > { %v640_v2 = vmax.f32 %v2012_v36, %v2015_v3  ;;  %1416 = vpow2.f32 %v755_v13  ;;  %v773_v63 = vmul.f32 1.442695, %v682_v60 }
 0x18a   : > { %v472_v41 = vpop.permute.xlu1 %471  ;;  %1418 = vpow2.f32 %v757_v0 }
 0x18b   : > { %857 = vadd.xlane.f32.xlu0 %v856_v14  ;;  %v2030_v17 = vmul.f32 %v1647_v21, %v472_v41  ;;  %v2033_v50 = vmul.f32 %v1649_v22, %v472_v41  ;;  %v681_v14 = vsub.f32 %v1767_v30, %v600_v46  ;;  %1420 = vpow2.f32 %v763_v48 }
 0x18c   : > { %1422 = vpow2.f32 %v765_v20 }
 0x18d   : > { %v646_v23 = vmax.f32 %v2030_v17, %v2033_v50  ;;  %v771_v41 = vmul.f32 1.442695, %v681_v14 }
 0x18e   : > { %v2039_v59 = vpop.eup %1412 }
 0x18f   : > { %641 = vmax.xlane.f32.xlu0 %v640_v2  ;;  %v2043_v1 = vpop.eup %1414  ;;  %v482_v2 = vpop.permute.xlu1 %481  ;;  %1424 = vpow2.f32 %v771_v41 }
 0x190   : > { %v2046_v30 = vmul.f32 %v1647_v21, %v482_v2  ;;  %v2049_v0 = vmul.f32 %v1649_v22, %v482_v2  ;;  %v868_v31 = vadd.f32 %v2043_v1, %v2039_v59  ;;  %1426 = vpow2.f32 %v773_v63 }
 0x192   : > { %v652_v13 = vmax.f32 %v2046_v30, %v2049_v0 }
 0x193   : > { %863 = vadd.xlane.f32.xlu0 %v862_v18  ;;  %v2053_v46 = vpop.eup %1416 }
 0x194   : > { %v2057_v43 = vpop.eup %1418 }
 0x195   : > { %v2059_v18 = vpop.eup %1420  ;;  %v874_v21 = vadd.f32 %v2057_v43, %v2053_v46 }
 0x196   : > { %2332 = vst [vmem:[#allocation12_spill] sm:$0xff] %v2059_v18  ;;  %v2063_v22 = vpop.eup %1422 }
 0x197   : > { %647 = vmax.xlane.f32.xlu0 %v646_v23  ;;  %2333 = vst [vmem:[#allocation13_spill] sm:$0xff] %v2063_v22  ;;  %v880_v14 = vadd.f32 %v2063_v22, %v2059_v18 }
 0x199   : > { %v2065_v48 = vpop.eup %1424 }
 0x19a   : > { %2334 = vst [vmem:[#allocation14_spill] sm:$0xff] %v2065_v48  ;;  %v2069_v20 = vpop.eup %1426 }
 0x19b   : > { %869 = vadd.xlane.f32.xlu0 %v868_v31  ;;  %2335 = vst [vmem:[#allocation15_spill] sm:$0xff] %v2069_v20  ;;  %v886_v60 = vadd.f32 %v2069_v20, %v2065_v48 }
 0x19f   : > { %653 = vmax.xlane.f32.xlu0 %v652_v13 }
 0x1a3   : > { %875 = vadd.xlane.f32.xlu0 %v874_v21 }
 0x1a7   : > { %881 = vadd.xlane.f32.xlu0 %v880_v14 }
 0x1ab   : > { %887 = vadd.xlane.f32.xlu0 %v886_v60 }
 0x1bf   : > { %v606_v23 = vpop.xlane.xlu1 %605 }
 0x1c0   : > { %v685_v2 = vsub.f32 %v1781_v51, %v606_v23  ;;  %v686_v41 = vsub.f32 %v1784_v54, %v606_v23 }
 0x1c2   : > { %v779_v63 = vmul.f32 1.442695, %v685_v2  ;;  %v781_v31 = vmul.f32 1.442695, %v686_v41 }
 0x1c4   : > { %1428 = vpow2.f32 %v779_v63 }
 0x1c5   : > { %1430 = vpow2.f32 %v781_v31 }
 0x1ce   : > { %v2075_v13 = vpop.eup %1428 }
 0x1cf   : > { %v2077_v21 = vpop.eup %1430 }
 0x1d0   : > { %v892_v14 = vadd.f32 %v2077_v21, %v2075_v13 }
 0x1d2   : > { %893 = vadd.xlane.f32.xlu0 %v892_v14 }
 0x1d7   : > { %v603_v18 = vpop.xlane.xlu0 %602 }
 0x1d8   : > { %v683_v60 = vsub.f32 %v1804_v7, %v603_v18  ;;  %v684_v48 = vsub.f32 %v1807_v8, %v603_v18 }
 0x1da   : > { %v775_v51 = vmul.f32 1.442695, %v683_v60  ;;  %v777_v20 = vmul.f32 1.442695, %v684_v48 }
 0x1db   : > { %v609_v54 = vpop.xlane.xlu0 %608 }
 0x1dc   : > { %1432 = vpow2.f32 %v775_v51  ;;  %v687_v23 = vsub.f32 %v1814_v19, %v609_v54  ;;  %v688_v2 = vsub.f32 %v1817_v27, %v609_v54 }
 0x1dd   : > { %1434 = vpow2.f32 %v777_v20 }
 0x1de   : > { %v783_v41 = vmul.f32 1.442695, %v687_v23  ;;  %v785_v63 = vmul.f32 1.442695, %v688_v2 }
 0x1df   : > { %v615_v31 = vpop.xlane.xlu1 %614  ;;  %v612_v22 = vpop.xlane.xlu0 %611 }
 0x1e0   : > { %1436 = vpow2.f32 %v783_v41  ;;  %v691_v14 = vsub.f32 %v1830_v42, %v615_v31  ;;  %v692_v7 = vsub.f32 %v1833_v45, %v615_v31  ;;  %v689_v8 = vsub.f32 %v1821_v28, %v612_v22 }
 0x1e1   : > { %1438 = vpow2.f32 %v785_v63  ;;  %v690_v18 = vsub.f32 %v1824_v34, %v612_v22 }
 0x1e2   : > { %v791_v48 = vmul.f32 1.442695, %v691_v14  ;;  %v793_v60 = vmul.f32 1.442695, %v692_v7  ;;  %v787_v19 = vmul.f32 1.442695, %v689_v8 }
 0x1e3   : > { %v789_v51 = vmul.f32 1.442695, %v690_v18  ;;  %v621_v27 = vpop.xlane.xlu1 %620  ;;  %v618_v20 = vpop.xlane.xlu0 %617 }
 0x1e4   : > { %1440 = vpow2.f32 %v791_v48  ;;  %v695_v54 = vsub.f32 %v1847_v9, %v621_v27  ;;  %v696_v23 = vsub.f32 %v1850_v26, %v621_v27  ;;  %v693_v42 = vsub.f32 %v1837_v58, %v618_v20 }
 0x1e5   : > { %1442 = vpow2.f32 %v793_v60  ;;  %v694_v45 = vsub.f32 %v1840_v25, %v618_v20 }
 0x1e6   : > { %v2093_v28 = vpop.eup %1432  ;;  %1444 = vpow2.f32 %v787_v19  ;;  %v799_v34 = vmul.f32 1.442695, %v695_v54  ;;  %v801_v22 = vmul.f32 1.442695, %v696_v23  ;;  %v795_v2 = vmul.f32 1.442695, %v693_v42 }
 0x1e7   : > { %v2095_v41 = vpop.eup %1434  ;;  %1446 = vpow2.f32 %v789_v51  ;;  %v797_v63 = vmul.f32 1.442695, %v694_v45  ;;  %v627_v31 = vpop.xlane.xlu1 %626 }
 0x1e8   : > { %v624_v14 = vpop.xlane.xlu0 %623  ;;  %1448 = vpow2.f32 %v799_v34  ;;  %v699_v9 = vsub.f32 %v1871_v39, %v627_v31  ;;  %v700_v58 = vsub.f32 %v1874_v33, %v627_v31  ;;  %v889_v7 = vadd.f32 %v2095_v41, %v2093_v28 }
 0x1e9   : > { %v697_v26 = vsub.f32 %v1854_v10, %v624_v14  ;;  %1450 = vpow2.f32 %v801_v22  ;;  %v698_v25 = vsub.f32 %v1857_v11, %v624_v14 }
 0x1ea   : > { %v2103_v8 = vpop.eup %1436  ;;  %1452 = vpow2.f32 %v795_v2  ;;  %v807_v18 = vmul.f32 1.442695, %v699_v9  ;;  %v809_v48 = vmul.f32 1.442695, %v700_v58  ;;  %890 = vadd.xlane.f32.xlu1 %v889_v7 }
 0x1eb   : > { %v803_v60 = vmul.f32 1.442695, %v697_v26  ;;  %v2105_v19 = vpop.eup %1438  ;;  %1454 = vpow2.f32 %v797_v63  ;;  %v805_v39 = vmul.f32 1.442695, %v698_v25  ;;  %v849_v33 = vpop.xlane.xlu1 %848 }
 0x1ec   : > { %v630_v51 = vpop.xlane.xlu0 %629  ;;  %1456 = vpow2.f32 %v807_v18  ;;  %v895_v27 = vadd.f32 %v2105_v19, %v2103_v8 }
 0x1ed   : > { %v701_v10 = vsub.f32 %v1884_v40, %v630_v51  ;;  %v702_v11 = vsub.f32 %v1887_v4, %v630_v51  ;;  %1458 = vpow2.f32 %v809_v48 }
 0x1ee   : > { %v2111_v20 = vpop.eup %1440  ;;  %1460 = vpow2.f32 %v803_v60  ;;  %896 = vadd.xlane.f32.xlu1 %v895_v27 }
 0x1ef   : > { %v811_v54 = vmul.f32 1.442695, %v701_v10  ;;  %v813_v23 = vmul.f32 1.442695, %v702_v11  ;;  %v2113_v42 = vpop.eup %1442  ;;  %1462 = vpow2.f32 %v805_v39  ;;  %v633_v45 = vpop.xlane.xlu1 %632 }
 0x1f0   : > { %v2115_v34 = vpop.eup %1444  ;;  %1464 = vrcp.f32 %v849_v33  ;;  %v703_v40 = vsub.f32 %v1898_v16, %v633_v45  ;;  %v704_v4 = vsub.f32 %v1901_v24, %v633_v45  ;;  %v852_v22 = vpop.xlane.xlu0 %851  ;;  %v901_v2 = vadd.f32 %v2113_v42, %v2111_v20 }
 0x1f1   : > { %v2121_v63 = vpop.eup %1446  ;;  %1466 = vpow2.f32 %v811_v54 }
 0x1f2   : > { %v2123_v31 = vpop.eup %1448  ;;  %1468 = vpow2.f32 %v813_v23  ;;  %v815_v14 = vmul.f32 1.442695, %v703_v40  ;;  %v817_v9 = vmul.f32 1.442695, %v704_v4  ;;  %v898_v58 = vadd.f32 %v2121_v63, %v2115_v34  ;;  %902 = vadd.xlane.f32.xlu1 %v901_v2 }
 0x1f3   : > { %v2127_v26 = vpop.eup %1450  ;;  %1470 = vrcp.f32 %v852_v22  ;;  %v2129_v16 = vpop.xlane.xlu1 %854 }
 0x1f4   : > { %v2131_v24 = vpop.eup %1452  ;;  %1472 = vpow2.f32 %v815_v14  ;;  %899 = vadd.xlane.f32.xlu0 %v898_v58  ;;  %v907_v25 = vadd.f32 %v2127_v26, %v2123_v31 }
 0x1f5   : > { %v2135_v7 = vpop.eup %1454  ;;  %1474 = vpow2.f32 %v817_v9 }
 0x1f6   : > { %v2137_v18 = vpop.eup %1456  ;;  %v904_v48 = vadd.f32 %v2135_v7, %v2131_v24  ;;  %908 = vadd.xlane.f32.xlu1 %v907_v25  ;;  %v2338_v25 = vld [vmem:[#allocation3_spill] sm:$0xff] }
 0x1f7   : > { %2336 = vst [vmem:[#allocation16_spill] sm:$0xff] %v2137_v18  ;;  %v2141_v60 = vpop.eup %1458  ;;  %v639_v39 = vpop.xlane.xlu1 %638 }
 0x1f8   : > { %v2143_v33 = vpop.eup %1460  ;;  %905 = vadd.xlane.f32.xlu0 %v904_v48  ;;  %v707_v51 = vsub.f32 %v1922_v29, %v639_v39  ;;  %v708_v10 = vsub.f32 %v1925_v55, %v639_v39  ;;  %v913_v11 = vadd.f32 %v2141_v60, %v2137_v18 }
 0x1f9   : > { %v2149_v27 = vpop.eup %1462 }
 0x1fa   : > { %v1465_v54 = vpop.eup %1464  ;;  %v823_v23 = vmul.f32 1.442695, %v707_v51  ;;  %v825_v45 = vmul.f32 1.442695, %v708_v10  ;;  %v910_v40 = vadd.f32 %v2149_v27, %v2143_v33  ;;  %914 = vadd.xlane.f32.xlu1 %v913_v11 }
 0x1fb   : > { %v2153_v4 = vpop.eup %1466  ;;  %v861_v22 = vpop.xlane.xlu1 %860  ;;  %v976_v9 = vmul.f32 %v1465_v54, %v1893_v49  ;;  %v975_v48 = vmul.f32 %v1465_v54, %v2338_v25 }
 0x1fc   : > { %2337 = vst [vmem:[#allocation17_spill] sm:$0xff] %v2153_v4  ;;  %v2155_v2 = vpop.eup %1468  ;;  %1476 = vpow2.f32 %v823_v23  ;;  %911 = vadd.xlane.f32.xlu0 %v910_v40 }
 0x1fd   : > { %v1471_v29 = vpop.eup %1470  ;;  %1478 = vpow2.f32 %v825_v45  ;;  %v916_v55 = vadd.f32 %v2155_v2, %v2153_v4 }
 0x1fe   : > { %v2159_v14 = vpop.eup %1472  ;;  %v978_v58 = vmul.f32 %v1471_v29, %v1907_v32  ;;  %v977_v39 = vmul.f32 %v1471_v29, %v1895_v15 }
 0x1ff   : > { %v2165_v51 = vpop.eup %1474  ;;  %v645_v10 = vpop.xlane.xlu1 %644 }
 0x200   : > { %917 = vadd.xlane.f32.xlu0 %v916_v55  ;;  %v711_v11 = vsub.f32 %v1944_v47, %v645_v10  ;;  %v712_v23 = vsub.f32 %v1947_v53, %v645_v10  ;;  %v1296_v45 = vpack.c.bf16 %v978_v58, %v976_v9  ;;  %v1298_v40 = vpack.c.bf16 %v977_v39, %v975_v48 }
 0x201   : > { %v919_v18 = vadd.f32 %v2165_v51, %v2159_v14 }
 0x202   : > { %v831_v49 = vmul.f32 1.442695, %v711_v11  ;;  %v833_v4 = vmul.f32 1.442695, %v712_v23  ;;  %1297 = vmatprep.subr.bf16.mxu1 %v1296_v45 }
 0x203   : > { %1299 = vmatpush1.bf16.xpose.msra.mxu1 %v1298_v40  ;;  %920 = vadd.xlane.f32.xlu1 %v919_v18  ;;  %v867_v32 = vpop.xlane.xlu1 %866 }
 0x204   : > { %1480 = vpow2.f32 %v831_v49 }
 0x205   : > { %1482 = vpow2.f32 %v833_v4 }
 0x206   : > { %v2171_v15 = vpop.eup %1476 }
 0x207   : > { %v2173_v54 = vpop.eup %1478  ;;  %v651_v47 = vpop.xlane.xlu1 %650 }
 0x208   : > { %v715_v53 = vsub.f32 %v1964_v52, %v651_v47  ;;  %v716_v29 = vsub.f32 %v1967_v61, %v651_v47  ;;  %v925_v55 = vadd.f32 %v2173_v54, %v2171_v15 }
 0x20a   : > { %v839_v9 = vmul.f32 1.442695, %v715_v53  ;;  %v841_v58 = vmul.f32 1.442695, %v716_v29  ;;  %926 = vadd.xlane.f32.xlu1 %v925_v55 }
 0x20c   : > { %1484 = vpow2.f32 %v839_v9 }
 0x20d   : > { %1486 = vpow2.f32 %v841_v58 }
 0x20e   : > { %v2179_v18 = vpop.eup %1480  ;;  %1488 = vrcp.f32 %v2129_v16 }
 0x20f   : > { %v2181_v4 = vpop.eup %1482 }
 0x210   : > { %v931_v25 = vadd.f32 %v2181_v4, %v2179_v18 }
 0x212   : > { %932 = vadd.xlane.f32.xlu1 %v931_v25 }
 0x214   : > { %v636_v48 = vpop.xlane.xlu0 %635 }
 0x215   : > { %v705_v61 = vsub.f32 %v1997_v35, %v636_v48  ;;  %v706_v39 = vsub.f32 %v2000_v44, %v636_v48 }
 0x216   : > { %v2185_v52 = vpop.eup %1484 }
 0x217   : > { %v2189_v10 = vpop.eup %1486  ;;  %v819_v11 = vmul.f32 1.442695, %v705_v61  ;;  %v821_v23 = vmul.f32 1.442695, %v706_v39  ;;  %v2339_v39 = vld [vmem:[#allocation4_spill] sm:$0xff] }
 0x218   : > { %v937_v45 = vadd.f32 %v2189_v10, %v2185_v52  ;;  %v858_v40 = vpop.xlane.xlu0 %857  ;;  %v1489_v55 = vpop.eup %1488 }
 0x219   : > { %1490 = vpow2.f32 %v819_v11  ;;  %v979_v11 = vmul.f32 %v1489_v55, %v2339_v39 }
 0x21a   : > { %938 = vadd.xlane.f32.xlu1 %v937_v45  ;;  %1492 = vpow2.f32 %v821_v23  ;;  %v873_v45 = vpop.xlane.xlu1 %872 }
 0x21b   : > { %1494 = vrcp.f32 %v858_v40 }
 0x21c   : > { %v642_v49 = vpop.xlane.xlu0 %641  ;;  %1496 = vrcp.f32 %v861_v22  ;;  %v980_v22 = vmul.f32 %v1489_v55, %v1919_v12 }
 0x21d   : > { %v709_v47 = vsub.f32 %v2012_v36, %v642_v49  ;;  %v710_v35 = vsub.f32 %v2015_v3, %v642_v49 }
 0x21e   : > { %v879_v55 = vpop.xlane.xlu1 %878 }
 0x21f   : > { %v827_v44 = vmul.f32 1.442695, %v709_v47  ;;  %v829_v53 = vmul.f32 1.442695, %v710_v35 }
 0x220   : > { %v864_v29 = vpop.xlane.xlu0 %863 }
 0x221   : > { %1498 = vpow2.f32 %v827_v44 }
 0x222   : > { %1500 = vpow2.f32 %v829_v53 }
 0x223   : > { %v2196_v9 = vpop.eup %1490  ;;  %1502 = vrcp.f32 %v864_v29 }
 0x224   : > { %v2198_v16 = vpop.eup %1492  ;;  %v648_v58 = vpop.xlane.xlu0 %647  ;;  %1504 = vrcp.f32 %v867_v32 }
 0x225   : > { %v1495_v25 = vpop.eup %1494  ;;  %v713_v48 = vsub.f32 %v2030_v17, %v648_v58  ;;  %v714_v36 = vsub.f32 %v2033_v50, %v648_v58  ;;  %v922_v3 = vadd.f32 %v2198_v16, %v2196_v9  ;;  %v1042_v17 = vld [vmem:[%s2306_s5] sm:$0xff] }
 0x226   : > { %v982_v61 = vmul.f32 %v1495_v25, %v2009_v62  ;;  %v981_v23 = vmul.f32 %v1495_v25, %v2005_v37  ;;  %v1497_v12 = vpop.eup %1496  ;;  %v2213_v37 = vpop.f32.mrb[0].mxu0 }
 0x227   : > { %v835_v40 = vmul.f32 1.442695, %v713_v48  ;;  %v837_v49 = vmul.f32 1.442695, %v714_v36  ;;  %923 = vadd.xlane.f32.xlu0 %v922_v3  ;;  %v2217_v29 = vpop.f32.mrb[1].mxu0  ;;  %v984_v36 = vmul.f32 %v1497_v12, %v1937_v5 }
 0x228   : > { %v1300_v50 = vpack.c.bf16 %v982_v61, %v980_v22  ;;  %v870_v47 = vpop.xlane.xlu0 %869  ;;  %v1302_v35 = vpack.c.bf16 %v981_v23, %v979_v11  ;;  %v983_v22 = vmul.f32 %v1497_v12, %v1933_v38 }
 0x229   : > { %1506 = vpow2.f32 %v835_v40 }
 0x22a   : > { %1508 = vpow2.f32 %v837_v49  ;;  %1301 = vmatprep.subr.bf16.mxu1 %v1300_v50 }
 0x22b   : > { %1045 = vperm.xlu1 %1371, %v1042_v17   ;;  %v2211_v62 = vpop.eup %1498  ;;  %1510 = vrcp.f32 %v870_v47  ;;  %1303 = vmatpush1.bf16.xpose.msra.mxu1 %v1302_v35  ;;  %v2341_v47 = vld [vmem:[#allocation5_spill] sm:$0xff] }
 0x22c   : > { %v2215_v44 = vpop.eup %1500  ;;  %v654_v53 = vpop.xlane.xlu0 %653  ;;  %1512 = vrcp.f32 %v873_v45  ;;  %v2340_v45 = vld [vmem:[#allocation6_spill] sm:$0xff] }
 0x22d   : > { %v1503_v32 = vpop.eup %1502  ;;  %v717_v58 = vsub.f32 %v2046_v30, %v654_v53  ;;  %v718_v25 = vsub.f32 %v2049_v0, %v654_v53  ;;  %v928_v48 = vadd.f32 %v2215_v44, %v2211_v62  ;;  %1514 = vrcp.f32 %v879_v55  ;;  %v885_v53 = vpop.xlane.xlu1 %884 }
 0x22e   : > { %v986_v3 = vmul.f32 %v1503_v32, %v2025_v6  ;;  %v985_v61 = vmul.f32 %v1503_v32, %v2020_v56  ;;  %v1505_v0 = vpop.eup %1504 }
 0x22f   : > { %v843_v39 = vmul.f32 1.442695, %v717_v58  ;;  %v845_v11 = vmul.f32 1.442695, %v718_v25  ;;  %929 = vadd.xlane.f32.xlu0 %v928_v48  ;;  %v988_v17 = vmul.f32 %v1505_v0, %v2340_v45  ;;  %v987_v35 = vmul.f32 %v1505_v0, %v2341_v47  ;;  %v2345_v47 = vld [vmem:[#allocation12_spill] sm:$0xff] }
 0x230   : > { %v1304_v23 = vpack.c.bf16 %v986_v3, %v984_v36  ;;  %v876_v30 = vpop.xlane.xlu0 %875  ;;  %v1306_v40 = vpack.c.bf16 %v985_v61, %v983_v22 }
 0x231   : > { %1516 = vpow2.f32 %v843_v39  ;;  %v2342_v39 = vld [vmem:[#allocation7_spill] sm:$0xff] }
 0x232   : > { %1518 = vpow2.f32 %v845_v11  ;;  %1305 = vmatprep.subr.bf16.mxu1 %v1304_v23 }
 0x233   : > { %v2227_v49 = vpop.eup %1506  ;;  %1520 = vrcp.f32 %v876_v30  ;;  %1307 = vmatpush1.bf16.xpose.msra.mxu1 %v1306_v40 }
 0x234   : > { %v2229_v5 = vpop.eup %1508  ;;  %v882_v38 = vpop.xlane.xlu0 %881 }
 0x235   : > { %v1511_v56 = vpop.eup %1510  ;;  %1522 = vrcp.f32 %v882_v38  ;;  %v934_v6 = vadd.f32 %v2229_v5, %v2227_v49  ;;  %v2343_v38 = vld [vmem:[#allocation9_spill] sm:$0xff] }
 0x236   : > { %v990_v50 = vmul.f32 %v1511_v56, %v2043_v1  ;;  %v989_v12 = vmul.f32 %v1511_v56, %v2039_v59  ;;  %v1513_v25 = vpop.eup %1512 }
 0x237   : > { %935 = vadd.xlane.f32.xlu0 %v934_v6  ;;  %v1515_v48 = vpop.eup %1514  ;;  %v992_v59 = vmul.f32 %v1513_v25, %v1977_v57  ;;  %v991_v11 = vmul.f32 %v1513_v25, %v2342_v39  ;;  %v2344_v6 = vld [vmem:[#allocation13_spill] sm:$0xff] }
 0x238   : > { %v1308_v32 = vpack.c.bf16 %v990_v50, %v988_v17  ;;  %v888_v55 = vpop.xlane.xlu0 %887  ;;  %v1310_v58 = vpack.c.bf16 %v989_v12, %v987_v35  ;;  %v996_v56 = vmul.f32 %v1515_v48, %v2343_v38  ;;  %v2346_v35 = vld [vmem:[#allocation15_spill] sm:$0xff] }
 0x239   : > { %1524 = vrcp.f32 %v888_v55 }
 0x23a   : > { %1309 = vmatprep.subr.bf16.mxu1 %v1308_v32  ;;  %1526 = vrcp.f32 %v885_v53  ;;  %v2347_v53 = vld [vmem:[#allocation8_spill] sm:$0xff]  ;;  %v2348_v32 = vld [vmem:[#allocation11_spill] sm:$0xff] }
 0x23b   : > { %v2237_v36 = vpop.eup %1516  ;;  %1311 = vmatpush1.bf16.xpose.msra.mxu1 %v1310_v58 }
 0x23c   : > { %v2239_v3 = vpop.eup %1518 }
 0x23d   : > { %v1521_v1 = vpop.eup %1520  ;;  %v940_v22 = vadd.f32 %v2239_v3, %v2237_v36 }
 0x23e   : > { %v994_v61 = vmul.f32 %v1521_v1, %v2057_v43  ;;  %v993_v23 = vmul.f32 %v1521_v1, %v2053_v46  ;;  %v995_v46 = vmul.f32 %v1515_v48, %v2347_v53  ;;  %v2349_v1 = vld [vmem:[#allocation14_spill] sm:$0xff] }
 0x23f   : > { %v1523_v30 = vpop.eup %1522  ;;  %941 = vadd.xlane.f32.xlu0 %v940_v22 }
 0x240   : > { %v1312_v40 = vpack.c.bf16 %v994_v61, %v992_v59  ;;  %v1314_v0 = vpack.c.bf16 %v993_v23, %v991_v11  ;;  %v998_v45 = vmul.f32 %v1523_v30, %v2344_v6  ;;  %v997_v43 = vmul.f32 %v1523_v30, %v2345_v47  ;;  %v2350_v59 = vld [vmem:[#allocation10_spill] sm:$0xff] }
 0x242   : > { %1313 = vmatprep.subr.bf16.mxu1 %v1312_v40  ;;  %v1316_v17 = vpack.c.bf16 %v998_v45, %v996_v56  ;;  %v1318_v58 = vpack.c.bf16 %v997_v43, %v995_v46 }
 0x243   : > { %v1525_v50 = vpop.eup %1524  ;;  %1315 = vmatpush1.bf16.xpose.msra.mxu1 %v1314_v0 }
 0x244   : > { %1317 = vmatprep.subr.bf16.mxu1 %v1316_v17  ;;  %v1527_v57 = vpop.eup %1526  ;;  %v1002_v12 = vmul.f32 %v1525_v50, %v2346_v35  ;;  %v1001_v22 = vmul.f32 %v1525_v50, %v2349_v1 }
 0x245   : > { %v1000_v55 = vmul.f32 %v1527_v57, %v2348_v32  ;;  %v999_v61 = vmul.f32 %v1527_v57, %v2350_v59 }
 0x247   : > { %v1320_v25 = vpack.c.bf16 %v1002_v12, %v1000_v55  ;;  %v1322_v39 = vpack.c.bf16 %v1001_v22, %v999_v61 }
 0x24b   : > { %1319 = vmatpush1.bf16.xpose.msra.mxu1 %v1318_v58 }
 0x24c   : > { %1321 = vmatprep.subr.bf16.mxu1 %v1320_v25 }
 0x253   : > { %1323 = vmatpush1.bf16.xpose.msra.mxu1 %v1322_v39 }
 0x25f   : > { %v894_v11 = vpop.xlane.xlu0 %893 }
 0x260   : > { %1528 = vrcp.f32 %v894_v11 }
 0x26a   : > { %v1529_v40 = vpop.eup %1528 }
 0x26b   : > { %v1006_v56 = vmul.f32 %v1529_v40, %v2077_v21  ;;  %v1005_v17 = vmul.f32 %v1529_v40, %v2075_v13 }
 0x277   : > { %v891_v23 = vpop.xlane.xlu1 %890 }
 0x278   : > { %1530 = vrcp.f32 %v891_v23 }
 0x27b   : > { %v897_v30 = vpop.xlane.xlu1 %896 }
 0x27c   : > { %1532 = vrcp.f32 %v897_v30 }
 0x27f   : > { %v903_v48 = vpop.xlane.xlu1 %902 }
 0x281   : > { %v900_v0 = vpop.xlane.xlu0 %899 }
 0x282   : > { %1534 = vrcp.f32 %v900_v0  ;;  %v1531_v38 = vpop.eup %1530 }
 0x283   : > { %1536 = vrcp.f32 %v903_v48  ;;  %v1004_v6 = vmul.f32 %v1531_v38, %v2095_v41  ;;  %v1003_v45 = vmul.f32 %v1531_v38, %v2093_v28  ;;  %v909_v57 = vpop.xlane.xlu1 %908 }
 0x285   : > { %v906_v50 = vpop.xlane.xlu0 %905  ;;  %v1324_v47 = vpack.c.bf16 %v1006_v56, %v1004_v6  ;;  %v1326_v43 = vpack.c.bf16 %v1005_v17, %v1003_v45  ;;  %v2351_v6 = vld [vmem:[#allocation17_spill] sm:$0xff]  ;;  %v2352_v17 = vld [vmem:[#allocation16_spill] sm:$0xff] }
 0x286   : > { %1538 = vrcp.f32 %v906_v50  ;;  %v1533_v12 = vpop.eup %1532 }
 0x287   : > { %1325 = vmatprep.subr.bf16.mxu1 %v1324_v47  ;;  %1540 = vrcp.f32 %v909_v57  ;;  %v1008_v46 = vmul.f32 %v1533_v12, %v2105_v19  ;;  %v1007_v28 = vmul.f32 %v1533_v12, %v2103_v8  ;;  %v915_v55 = vpop.xlane.xlu1 %914 }
 0x288   : > { %1327 = vmatpush1.bf16.xpose.msra.mxu1 %v1326_v43 }
 0x289   : > { %v912_v35 = vpop.xlane.xlu0 %911 }
 0x28a   : > { %1542 = vrcp.f32 %v912_v35 }
 0x28c   : > { %v1535_v53 = vpop.eup %1534 }
 0x28d   : > { %v918_v21 = vpop.xlane.xlu0 %917  ;;  %v1010_v41 = vmul.f32 %v1535_v53, %v2121_v63  ;;  %v1009_v13 = vmul.f32 %v1535_v53, %v2115_v34  ;;  %v1537_v32 = vpop.eup %1536 }
 0x28e   : > { %1544 = vrcp.f32 %v918_v21  ;;  %v1012_v22 = vmul.f32 %v1537_v32, %v2113_v42  ;;  %v1011_v39 = vmul.f32 %v1537_v32, %v2111_v20 }
 0x28f   : > { %v1328_v58 = vpack.c.bf16 %v1010_v41, %v1008_v46  ;;  %v1330_v25 = vpack.c.bf16 %v1009_v13, %v1007_v28  ;;  %1546 = vrcp.f32 %v915_v55 }
 0x290   : > { %v1539_v1 = vpop.eup %1538  ;;  %v921_v42 = vpop.xlane.xlu1 %920 }
 0x291   : > { %1329 = vmatprep.subr.bf16.mxu1 %v1328_v58  ;;  %v1014_v59 = vmul.f32 %v1539_v1, %v2135_v7  ;;  %v1541_v19 = vpop.eup %1540  ;;  %v1013_v8 = vmul.f32 %v1539_v1, %v2131_v24  ;;  %1548 = vrcp.f32 %v921_v42 }
 0x292   : > { %1331 = vmatpush1.bf16.xpose.msra.mxu1 %v1330_v25  ;;  %v1016_v11 = vmul.f32 %v1541_v19, %v2127_v26  ;;  %v1015_v24 = vmul.f32 %v1541_v19, %v2123_v31 }
 0x293   : > { %v1332_v61 = vpack.c.bf16 %v1014_v59, %v1012_v22  ;;  %v1334_v23 = vpack.c.bf16 %v1013_v8, %v1011_v39 }
 0x294   : > { %v1543_v63 = vpop.eup %1542 }
 0x295   : > { %1333 = vmatprep.subr.bf16.mxu1 %v1332_v61  ;;  %v1018_v34 = vmul.f32 %v1543_v63, %v2149_v27  ;;  %v1017_v48 = vmul.f32 %v1543_v63, %v2143_v33 }
 0x297   : > { %v1336_v30 = vpack.c.bf16 %v1018_v34, %v1016_v11  ;;  %v927_v38 = vpop.xlane.xlu1 %926  ;;  %v1338_v56 = vpack.c.bf16 %v1017_v48, %v1015_v24 }
 0x298   : > { %v1545_v40 = vpop.eup %1544 }
 0x299   : > { %v1547_v7 = vpop.eup %1546  ;;  %v1022_v0 = vmul.f32 %v1545_v40, %v2155_v2  ;;  %v1021_v45 = vmul.f32 %v1545_v40, %v2351_v6 }
 0x29a   : > { %1335 = vmatpush1.bf16.xpose.msra.mxu1 %v1334_v23  ;;  %v1020_v27 = vmul.f32 %v1547_v7, %v2141_v60  ;;  %v1019_v50 = vmul.f32 %v1547_v7, %v2352_v17 }
 0x29b   : > { %1337 = vmatprep.subr.bf16.mxu1 %v1336_v30  ;;  %v1549_v43 = vpop.eup %1548 }
 0x29c   : > { %v1340_v20 = vpack.c.bf16 %v1022_v0, %v1020_v27  ;;  %v1342_v47 = vpack.c.bf16 %v1021_v45, %v1019_v50  ;;  %v1024_v12 = vmul.f32 %v1549_v43, %v2165_v51  ;;  %v1023_v21 = vmul.f32 %v1549_v43, %v2159_v14 }
 0x29f   : > { %v933_v26 = vpop.xlane.xlu1 %932 }
 0x2a2   : > { %1339 = vmatpush1.bf16.xpose.msra.mxu1 %v1338_v56 }
 0x2a3   : > { %1341 = vmatprep.subr.bf16.mxu1 %v1340_v20 }
 0x2a7   : > { %v939_v57 = vpop.xlane.xlu1 %938 }
 0x2aa   : > { %1343 = vmatpush1.bf16.xpose.msra.mxu1 %v1342_v47 }
 0x2ab   : > { %v1046_v33 = vpop.permute.xlu1 %1045 }
 0x2ac   : > { %v1121_v2 = vadd.f32 %v2217_v29, %v1046_v33 }
 0x2ae   : > { %1187 = vmatprep.mubr.f32.mxu1 %v1121_v2 }
 0x2b4   : > { %v924_v31 = vpop.xlane.xlu0 %923 }
 0x2b5   : > { %1550 = vrcp.f32 %v924_v31 }
 0x2b6   : > { %1552 = vrcp.f32 %v927_v38 }
 0x2bc   : > { %v930_v60 = vpop.xlane.xlu0 %929 }
 0x2bd   : > { %1554 = vrcp.f32 %v930_v60 }
 0x2be   : > { %1556 = vrcp.f32 %v933_v26 }
 0x2bf   : > { %v1551_v35 = vpop.eup %1550 }
 0x2c0   : > { %v1026_v53 = vmul.f32 %v1551_v35, %v2198_v16  ;;  %v1025_v46 = vmul.f32 %v1551_v35, %v2196_v9  ;;  %v1553_v13 = vpop.eup %1552 }
 0x2c1   : > { %v1028_v55 = vmul.f32 %v1553_v13, %v2173_v54  ;;  %v1027_v51 = vmul.f32 %v1553_v13, %v2171_v15 }
 0x2c2   : > { %v1344_v41 = vpack.c.bf16 %v1026_v53, %v1024_v12  ;;  %v1346_v28 = vpack.c.bf16 %v1025_v46, %v1023_v21 }
 0x2c4   : > { %1345 = vmatprep.subr.bf16.mxu1 %v1344_v41  ;;  %v936_v29 = vpop.xlane.xlu0 %935 }
 0x2c5   : > { %1558 = vrcp.f32 %v936_v29  ;;  %1347 = vmatpush1.bf16.xpose.msra.mxu1 %v1346_v28 }
 0x2c6   : > { %1560 = vrcp.f32 %v939_v57 }
 0x2c7   : > { %v1555_v32 = vpop.eup %1554 }
 0x2c8   : > { %v1030_v58 = vmul.f32 %v1555_v32, %v2215_v44  ;;  %v1029_v16 = vmul.f32 %v1555_v32, %v2211_v62  ;;  %v1557_v1 = vpop.eup %1556 }
 0x2c9   : > { %v1032_v59 = vmul.f32 %v1557_v1, %v2181_v4  ;;  %v1031_v54 = vmul.f32 %v1557_v1, %v2179_v18  ;;  %v1119_v18 = vadd.f32 %v2213_v37, %v1046_v33 }
 0x2ca   : > { %v1348_v14 = vpack.c.bf16 %v1030_v58, %v1028_v55  ;;  %v1350_v25 = vpack.c.bf16 %v1029_v16, %v1027_v51 }
 0x2cc   : > { %1349 = vmatprep.subr.bf16.mxu1 %v1348_v14  ;;  %v942_v9 = vpop.xlane.xlu0 %941 }
 0x2cd   : > { %1562 = vrcp.f32 %v942_v9  ;;  %1351 = vmatpush1.bf16.xpose.msra.mxu1 %v1350_v25 }
 0x2cf   : > { %v1559_v22 = vpop.eup %1558 }
 0x2d0   : > { %v1034_v19 = vmul.f32 %v1559_v22, %v2229_v5  ;;  %v1033_v44 = vmul.f32 %v1559_v22, %v2227_v49  ;;  %v1561_v62 = vpop.eup %1560  ;;  %v1194_v49 = vstv %s290_s16 }
 0x2d1   : > { %v1036_v8 = vmul.f32 %v1561_v62, %v2189_v10  ;;  %v1035_v39 = vmul.f32 %v1561_v62, %v2185_v52 }
 0x2d2   : > { %v1352_v15 = vpack.c.bf16 %v1034_v19, %v1032_v59  ;;  %v1354_v61 = vpack.c.bf16 %v1033_v44, %v1031_v54 }
 0x2d4   : > { %1353 = vmatprep.subr.bf16.mxu1 %v1352_v15 }
 0x2d5   : > { %1355 = vmatpush1.bf16.xpose.msra.mxu1 %v1354_v61 }
 0x2d7   : > { %v1563_v63 = vpop.eup %1562 }
 0x2d8   : > { %v1038_v34 = vmul.f32 %v1563_v63, %v2239_v3  ;;  %v1037_v4 = vmul.f32 %v1563_v63, %v2237_v36 }
 0x2da   : > { %v1356_v5 = vpack.c.bf16 %v1038_v34, %v1036_v8  ;;  %v1358_v11 = vpack.c.bf16 %v1037_v4, %v1035_v39 }
 0x2dc   : > { %1357 = vmatprep.subr.bf16.mxu1 %v1356_v5 }
 0x2dd   : > { %1359 = vmatpush1.bf16.xpose.msra.mxu1 %v1358_v11 }
 0x2e4   : > { %1188 = vmatmul.mubr.f32.vlgmr.msra.gmra.mrb[0].mxu1 %v1119_v18 }
 0x3b7   : > { %v1189_v10 = vpop.f32.mrb[0].mxu1 }
 0x3b8   : > { %v1195_v3 = vmul.f32 %v1194_v49, %v1189_v10  ;;  %v1191_v23 = vpop.f32.mrb[1].mxu1 }
 0x3b9   : > { %v1196_v52 = vmul.f32 %v1194_v49, %v1191_v23 }
 0x3ba   : > { %1197 = vst [vmem:[%s289_s19] sm:$0xff] %v1195_v3 }
 0x3bb   : > { %1198 = vst [vmem:[%s289_s19 + $0x8] sm:$0xff] %v1196_v52 }
 0x3bc PF: > { %s17_s23 = sadd.s32 1, %s1570_s23  }
 0x3bd   : > { %p14_p4 = scmp.ge.s32.totalorder %s17_s23, 4  }
 0x3bf   :  { %16 = sbr.rel (!%p14_p4) target bundleno = 2 (0x2), region = 80 }

</bundles_post_ra>
